<compile_context>
chip_gen: v7x
topology: tpu7x:2x2x1
jax: 0.10.0
libtpu: 0.0.40
codegen_flags: <defaults>
</compile_context>

<pallas_src>
import jax
import jax.numpy as jnp
from jax.experimental import pallas as pl
from jax.experimental.pallas import tpu as pltpu

LANE = 128
_EPS = 1e-5                       # nn.BatchNorm1d default eps
_VMEM_BUDGET = 40 * 1024 * 1024   # conservative: leaves headroom on v7x (64 MiB)


def _round_up(x, m):
    return ((x + m - 1) // m) * m


# --------------------------------------------------------------------------
# Kernel: whole network forward for one batch tile.
# --------------------------------------------------------------------------
def mlp_kernel(x_ref, *refs):
    """refs = (w1, b1, ..., w6, b6, out_ref).

    Weights are bf16 [in, out] with eval-mode BatchNorm already folded in;
    biases are f32 [1, out].  Dropout is identity in eval mode, so omitted.
    """
    refs = list(refs)
    out_ref = refs.pop()
    n_layers = len(refs) // 2

    # f32 input tile -> bf16 activations (cast happens in VMEM, not in HBM).
    h = x_ref[...].astype(jnp.bfloat16)
    for i in range(n_layers):
        w = refs[2 * i][...]                         # bf16 [in, out]
        b = refs[2 * i + 1][...]                     # f32  [1, out]
        z = jnp.dot(h, w, preferred_element_type=jnp.float32) + b
        if i < n_layers - 1:
            # ReLU on the f32 accumulator (right choice on v5e too), then
            # back to bf16 for the next MXU op.  Dropout = identity (eval).
            h = jnp.maximum(z, 0.0).astype(jnp.bfloat16)
        else:
            out_ref[...] = z                         # f32 logits, lane-padded


# --------------------------------------------------------------------------
# Wrapper
# --------------------------------------------------------------------------
def _vmem_estimate_bytes(tb, feat, nc_pad, params):
    x_bytes = 2 * tb * feat * 4                      # f32 input, double-buffered
    out_bytes = 2 * tb * nc_pad * 4                  # f32 output, double-buffered
    p_bytes = sum(2 * int(p.size) * p.dtype.itemsize for p in params)
    return x_bytes + out_bytes + p_bytes


def baseline_alt2_forward(x_flat, params, *, num_classes, tb=None):
    """x_flat: [B, input_size] float32 (already flattened, as nn.Flatten).

    params: flat list [w1, b1, ..., w6, b6] from fold_params(): BN folded in,
    bf16 [in, out] weights, f32 [1, out] biases, classifier lane-padded to a
    multiple of 128 output columns.
    """
    B, F = x_flat.shape
    nc_pad = params[-1].shape[1]                     # lane-padded class dim

    if tb is None:
        # Small B: one grid step (per-step overhead dominates otherwise).
        # Large B: 512-row tiles (>=85% of HBM roofline in measurements) and
        # a multi-step "parallel" grid that v7x can shard across its 2 TCs.
        tb = _round_up(B, 8) if B <= 512 else 512
    tb = max(8, _round_up(tb, 8))
    while tb > 8 and _vmem_estimate_bytes(tb, F, nc_pad, params) > _VMEM_BUDGET:
        tb = max(8, _round_up(tb // 2, 8))

    grid = pl.cdiv(B, tb)                            # partial last block is OK
    vmem_limit = int(min(max(2 * _vmem_estimate_bytes(tb, F, nc_pad, params),
                             32 * 1024 * 1024), 64 * 1024 * 1024))

    def build(single_buffer_weights):
        def param_spec(p):
            if single_buffer_weights:
                # Constant index map -> fetched once; single buffer suffices.
                return pl.BlockSpec(p.shape, lambda i: (0, 0),
                                    pipeline_mode=pl.Buffered(1))
            return pl.BlockSpec(p.shape, lambda i: (0, 0))

        in_specs = [pl.BlockSpec((tb, F), lambda i: (i, 0))]
        in_specs += [param_spec(p) for p in params]

        return pl.pallas_call(
            mlp_kernel,
            out_shape=jax.ShapeDtypeStruct((B, nc_pad), jnp.float32),
            grid_spec=pl.GridSpec(
                grid=(grid,),
                in_specs=in_specs,
                out_specs=pl.BlockSpec((tb, nc_pad), lambda i: (i, 0)),
            ),
            compiler_params=pltpu.CompilerParams(
                dimension_semantics=("parallel",),
                vmem_limit_bytes=vmem_limit),
        )

    # Prefer single-buffered resident weights; fall back to default double
    # buffering if this JAX/Mosaic version rejects Buffered(1).  (Fallback is
    # effective when called eagerly, as in the test below.)
    try:
        out = build(True)(x_flat, *params)
    except Exception:
        out = build(False)(x_flat, *params)

    return out[:, :num_classes]


# --------------------------------------------------------------------------
# Parameters (mirroring the PyTorch __init__) and references
# --------------------------------------------------------------------------
def make_raw_params(key, input_size, hidden_size, num_classes):
    """f32 parameters mirroring the module __init__ (kaiming_normal_ fan_in /
    relu weights, zero biases) plus deterministic, non-trivial eval-mode
    BatchNorm statistics for the 5 hidden layers."""
    dims = [
        (input_size, hidden_size),
        (hidden_size, hidden_size * 2),
        (hidden_size * 2, hidden_size * 2),
        (hidden_size * 2, hidden_size),
        (hidden_size, hidden_size // 2),
        (hidden_size // 2, num_classes),
    ]
    raw = []
    for li, (fan_in, fan_out) in enumerate(dims):
        key, kw, kg, kb, km, kv = jax.random.split(key, 6)
        w = jax.random.normal(kw, (fan_in, fan_out), jnp.float32) * jnp.sqrt(
            2.0 / fan_in)
        b = jnp.zeros((fan_out,), jnp.float32)
        if li < len(dims) - 1:
            gamma = 1.0 + 0.1 * jax.random.normal(kg, (fan_out,), jnp.float32)
            beta = 0.1 * jax.random.normal(kb, (fan_out,), jnp.float32)
            r_mean = 0.1 * jax.random.normal(km, (fan_out,), jnp.float32)
            r_var = 1.0 + 0.1 * jax.random.uniform(kv, (fan_out,), jnp.float32)
            bn = (gamma, beta, r_mean, r_var)
        else:
            bn = None
        raw.append((w, b, bn))
    return raw


def fold_params(raw):
    """Fold eval-mode BN into each Linear, cast weights to bf16, and lane-pad
    the classifier to a multiple of 128 output columns (dense store)."""
    params = []
    for w, b, bn in raw:
        if bn is not None:
            gamma, beta, r_mean, r_var = bn
            scale = gamma / jnp.sqrt(r_var + _EPS)
            w = w * scale[None, :]
            b = b * scale + (beta - r_mean * scale)
        else:
            pad = _round_up(w.shape[1], LANE) - w.shape[1]
            w = jnp.pad(w, ((0, 0), (0, pad)))
            b = jnp.pad(b, (0, pad))
        params += [w.astype(jnp.bfloat16),
                   b.reshape(1, -1).astype(jnp.float32)]
    return params


def reference_forward_f32(x_flat, raw):
    """Pure-f32 reference with the PyTorch eval-mode semantics (explicit BN
    affine with running stats, identity Dropout).  Non-circular check."""
    h = x_flat
    for w, b, bn in raw:
        z = h @ w + b
        if bn is not None:
            gamma, beta, r_mean, r_var = bn
            z = (z - r_mean) / jnp.sqrt(r_var + _EPS) * gamma + beta
            h = jnp.maximum(z, 0.0)
        else:
            h = z
    return h


def reference_forward_kernel_numerics(x_flat, params, num_classes):
    """Reference with the exact kernel numerics (bf16 weights/activations,
    f32 MXU accumulation, folded BN, identity Dropout)."""
    h = x_flat.astype(jnp.bfloat16)
    n_layers = len(params) // 2
    for i in range(n_layers):
        w, b = params[2 * i], params[2 * i + 1]
        z = jnp.dot(h, w, preferred_element_type=jnp.float32) + b
        if i < n_layers - 1:
            h = jnp.maximum(z, 0.0).astype(jnp.bfloat16)
        else:
            h = z
    return h[:, :num_classes]


# --------------------------------------------------------------------------
# Smoke test
# --------------------------------------------------------------------------
if __name__ == "__main__":
    # Small shapes consistent with the module: NCHW image input flattened.
    B, C, H, W = 40, 4, 16, 16
    input_size = C * H * W          # 1024
    hidden_size = 32
    num_classes = 10

    key = jax.random.PRNGKey(0)
    key, kx = jax.random.split(key)
    x = jax.random.normal(kx, (B, C, H, W), jnp.float32)
    x_flat = x.reshape(B, -1)       # nn.Flatten()

    raw = make_raw_params(key, input_size, hidden_size, num_classes)
    params = fold_params(raw)

    # Default path: single grid step (tb = 40, no padding, no host-side cast).
    out = jax.block_until_ready(
        baseline_alt2_forward(x_flat, params, num_classes=num_classes))
    # Tiled path: grid = 3 with a partial last block (exercises OOB-row drop).
    out_tiled = jax.block_until_ready(
        baseline_alt2_forward(x_flat, params, num_classes=num_classes, tb=16))

    assert out.shape == (B, num_classes)
    assert out_tiled.shape == (B, num_classes)

    # Tight check against a reference with identical (bf16/f32-acc) numerics.
    ref_bf16 = reference_forward_kernel_numerics(x_flat, params, num_classes)
    assert jnp.allclose(out, ref_bf16, atol=2e-3, rtol=2e-3), \
        float(jnp.max(jnp.abs(out - ref_bf16)))
    assert jnp.allclose(out_tiled, ref_bf16, atol=2e-3, rtol=2e-3), \
        float(jnp.max(jnp.abs(out_tiled - ref_bf16)))

    # Non-circular sanity check against the pure-f32, unfolded-BN reference
    # (PyTorch eval semantics).  Expected bf16 drift is ~0.1 on O(1) logits;
    # a gross error (wrong BN fold / wrong layer wiring) would be O(1)+.
    ref_f32 = reference_forward_f32(x_flat, raw)
    assert float(jnp.max(jnp.abs(out - ref_f32))) < 0.5, \
        float(jnp.max(jnp.abs(out - ref_f32)))

    print("KERNEL_OK")
</pallas_src>

<mosaic_0001>
module attributes {stable_mosaic.version = 11 : i64} {
  func.func @mlp_kernel(%arg0: i32, %arg1: memref<40x1024xf32, #tpu.memory_space<vmem>>, %arg2: memref<1024x32xbf16, #tpu.memory_space<vmem>>, %arg3: memref<1x32xf32, #tpu.memory_space<vmem>>, %arg4: memref<32x64xbf16, #tpu.memory_space<vmem>>, %arg5: memref<1x64xf32, #tpu.memory_space<vmem>>, %arg6: memref<64x64xbf16, #tpu.memory_space<vmem>>, %arg7: memref<1x64xf32, #tpu.memory_space<vmem>>, %arg8: memref<64x32xbf16, #tpu.memory_space<vmem>>, %arg9: memref<1x32xf32, #tpu.memory_space<vmem>>, %arg10: memref<32x16xbf16, #tpu.memory_space<vmem>>, %arg11: memref<1x16xf32, #tpu.memory_space<vmem>>, %arg12: memref<16x128xbf16, #tpu.memory_space<vmem>>, %arg13: memref<1x128xf32, #tpu.memory_space<vmem>>, %arg14: memref<40x128xf32, #tpu.memory_space<vmem>>) attributes {dimension_semantics = [#tpu.dimension_semantics<parallel>], iteration_bounds = array<i64: 1>, scalar_prefetch = 0 : i64, scratch_operands = 0 : i64, tpu.core_type = #tpu.core_type<tc>, window_params = [{transform_indices = @transform_0, window_bounds = array<i64: 40, 1024>}, {pipeline_mode = #tpu.pipeline_mode<synchronous>, transform_indices = @transform_1, window_bounds = array<i64: 1024, 32>}, {pipeline_mode = #tpu.pipeline_mode<synchronous>, transform_indices = @transform_2, window_bounds = array<i64: 1, 32>}, {pipeline_mode = #tpu.pipeline_mode<synchronous>, transform_indices = @transform_3, window_bounds = array<i64: 32, 64>}, {pipeline_mode = #tpu.pipeline_mode<synchronous>, transform_indices = @transform_4, window_bounds = array<i64: 1, 64>}, {pipeline_mode = #tpu.pipeline_mode<synchronous>, transform_indices = @transform_5, window_bounds = array<i64: 64, 64>}, {pipeline_mode = #tpu.pipeline_mode<synchronous>, transform_indices = @transform_6, window_bounds = array<i64: 1, 64>}, {pipeline_mode = #tpu.pipeline_mode<synchronous>, transform_indices = @transform_7, window_bounds = array<i64: 64, 32>}, {pipeline_mode = #tpu.pipeline_mode<synchronous>, transform_indices = @transform_8, window_bounds = array<i64: 1, 32>}, {pipeline_mode = #tpu.pipeline_mode<synchronous>, transform_indices = @transform_9, window_bounds = array<i64: 32, 16>}, {pipeline_mode = #tpu.pipeline_mode<synchronous>, transform_indices = @transform_10, window_bounds = array<i64: 1, 16>}, {pipeline_mode = #tpu.pipeline_mode<synchronous>, transform_indices = @transform_11, window_bounds = array<i64: 16, 128>}, {pipeline_mode = #tpu.pipeline_mode<synchronous>, transform_indices = @transform_12, window_bounds = array<i64: 1, 128>}, {transform_indices = @transform_13, window_bounds = array<i64: 40, 128>}]} {
    %c0 = arith.constant 0 : index
    %c0_0 = arith.constant 0 : index
    %0 = vector.load %arg1[%c0, %c0_0] : memref<40x1024xf32, #tpu.memory_space<vmem>>, vector<40x1024xf32>
    %1 = arith.truncf %0 : vector<40x1024xf32> to vector<40x1024xbf16>
    %c0_1 = arith.constant 0 : index
    %c0_2 = arith.constant 0 : index
    %2 = vector.load %arg2[%c0_1, %c0_2] : memref<1024x32xbf16, #tpu.memory_space<vmem>>, vector<1024x32xbf16>
    %c0_3 = arith.constant 0 : index
    %c0_4 = arith.constant 0 : index
    %3 = vector.load %arg3[%c0_3, %c0_4] : memref<1x32xf32, #tpu.memory_space<vmem>>, vector<1x32xf32>
    %cst = arith.constant dense<0.000000e+00> : vector<40x32xf32>
    %4 = tpu.matmul %1, %2, %cst {dimension_numbers = #tpu.dot_dimension_numbers<[1], [0], [0], [1], [0, 0, 1, 1], [], []>} : vector<40x1024xbf16>, vector<1024x32xbf16>, vector<40x32xf32> -> vector<40x32xf32>
    %5 = vector.broadcast %3 : vector<1x32xf32> to vector<40x32xf32>
    %6 = arith.addf %4, %5 : vector<40x32xf32>
    %cst_5 = arith.constant 0.000000e+00 : f32
    %7 = vector.broadcast %cst_5 : f32 to vector<40x32xf32>
    %8 = arith.maximumf %6, %7 : vector<40x32xf32>
    %9 = arith.truncf %8 : vector<40x32xf32> to vector<40x32xbf16>
    %c0_6 = arith.constant 0 : index
    %c0_7 = arith.constant 0 : index
    %10 = vector.load %arg4[%c0_6, %c0_7] : memref<32x64xbf16, #tpu.memory_space<vmem>>, vector<32x64xbf16>
    %c0_8 = arith.constant 0 : index
    %c0_9 = arith.constant 0 : index
    %11 = vector.load %arg5[%c0_8, %c0_9] : memref<1x64xf32, #tpu.memory_space<vmem>>, vector<1x64xf32>
    %cst_10 = arith.constant dense<0.000000e+00> : vector<40x64xf32>
    %12 = tpu.matmul %9, %10, %cst_10 {dimension_numbers = #tpu.dot_dimension_numbers<[1], [0], [0], [1], [0, 0, 1, 1], [], []>} : vector<40x32xbf16>, vector<32x64xbf16>, vector<40x64xf32> -> vector<40x64xf32>
    %13 = vector.broadcast %11 : vector<1x64xf32> to vector<40x64xf32>
    %14 = arith.addf %12, %13 : vector<40x64xf32>
    %cst_11 = arith.constant 0.000000e+00 : f32
    %15 = vector.broadcast %cst_11 : f32 to vector<40x64xf32>
    %16 = arith.maximumf %14, %15 : vector<40x64xf32>
    %17 = arith.truncf %16 : vector<40x64xf32> to vector<40x64xbf16>
    %c0_12 = arith.constant 0 : index
    %c0_13 = arith.constant 0 : index
    %18 = vector.load %arg6[%c0_12, %c0_13] : memref<64x64xbf16, #tpu.memory_space<vmem>>, vector<64x64xbf16>
    %c0_14 = arith.constant 0 : index
    %c0_15 = arith.constant 0 : index
    %19 = vector.load %arg7[%c0_14, %c0_15] : memref<1x64xf32, #tpu.memory_space<vmem>>, vector<1x64xf32>
    %cst_16 = arith.constant dense<0.000000e+00> : vector<40x64xf32>
    %20 = tpu.matmul %17, %18, %cst_16 {dimension_numbers = #tpu.dot_dimension_numbers<[1], [0], [0], [1], [0, 0, 1, 1], [], []>} : vector<40x64xbf16>, vector<64x64xbf16>, vector<40x64xf32> -> vector<40x64xf32>
    %21 = vector.broadcast %19 : vector<1x64xf32> to vector<40x64xf32>
    %22 = arith.addf %20, %21 : vector<40x64xf32>
    %cst_17 = arith.constant 0.000000e+00 : f32
    %23 = vector.broadcast %cst_17 : f32 to vector<40x64xf32>
    %24 = arith.maximumf %22, %23 : vector<40x64xf32>
    %25 = arith.truncf %24 : vector<40x64xf32> to vector<40x64xbf16>
    %c0_18 = arith.constant 0 : index
    %c0_19 = arith.constant 0 : index
    %26 = vector.load %arg8[%c0_18, %c0_19] : memref<64x32xbf16, #tpu.memory_space<vmem>>, vector<64x32xbf16>
    %c0_20 = arith.constant 0 : index
    %c0_21 = arith.constant 0 : index
    %27 = vector.load %arg9[%c0_20, %c0_21] : memref<1x32xf32, #tpu.memory_space<vmem>>, vector<1x32xf32>
    %cst_22 = arith.constant dense<0.000000e+00> : vector<40x32xf32>
    %28 = tpu.matmul %25, %26, %cst_22 {dimension_numbers = #tpu.dot_dimension_numbers<[1], [0], [0], [1], [0, 0, 1, 1], [], []>} : vector<40x64xbf16>, vector<64x32xbf16>, vector<40x32xf32> -> vector<40x32xf32>
    %29 = vector.broadcast %27 : vector<1x32xf32> to vector<40x32xf32>
    %30 = arith.addf %28, %29 : vector<40x32xf32>
    %cst_23 = arith.constant 0.000000e+00 : f32
    %31 = vector.broadcast %cst_23 : f32 to vector<40x32xf32>
    %32 = arith.maximumf %30, %31 : vector<40x32xf32>
    %33 = arith.truncf %32 : vector<40x32xf32> to vector<40x32xbf16>
    %c0_24 = arith.constant 0 : index
    %c0_25 = arith.constant 0 : index
    %34 = vector.load %arg10[%c0_24, %c0_25] : memref<32x16xbf16, #tpu.memory_space<vmem>>, vector<32x16xbf16>
    %c0_26 = arith.constant 0 : index
    %c0_27 = arith.constant 0 : index
    %35 = vector.load %arg11[%c0_26, %c0_27] : memref<1x16xf32, #tpu.memory_space<vmem>>, vector<1x16xf32>
    %cst_28 = arith.constant dense<0.000000e+00> : vector<40x16xf32>
    %36 = tpu.matmul %33, %34, %cst_28 {dimension_numbers = #tpu.dot_dimension_numbers<[1], [0], [0], [1], [0, 0, 1, 1], [], []>} : vector<40x32xbf16>, vector<32x16xbf16>, vector<40x16xf32> -> vector<40x16xf32>
    %37 = vector.broadcast %35 : vector<1x16xf32> to vector<40x16xf32>
    %38 = arith.addf %36, %37 : vector<40x16xf32>
    %cst_29 = arith.constant 0.000000e+00 : f32
    %39 = vector.broadcast %cst_29 : f32 to vector<40x16xf32>
    %40 = arith.maximumf %38, %39 : vector<40x16xf32>
    %41 = arith.truncf %40 : vector<40x16xf32> to vector<40x16xbf16>
    %c0_30 = arith.constant 0 : index
    %c0_31 = arith.constant 0 : index
    %42 = vector.load %arg12[%c0_30, %c0_31] : memref<16x128xbf16, #tpu.memory_space<vmem>>, vector<16x128xbf16>
    %c0_32 = arith.constant 0 : index
    %c0_33 = arith.constant 0 : index
    %43 = vector.load %arg13[%c0_32, %c0_33] : memref<1x128xf32, #tpu.memory_space<vmem>>, vector<1x128xf32>
    %cst_34 = arith.constant dense<0.000000e+00> : vector<40x128xf32>
    %44 = tpu.matmul %41, %42, %cst_34 {dimension_numbers = #tpu.dot_dimension_numbers<[1], [0], [0], [1], [0, 0, 1, 1], [], []>} : vector<40x16xbf16>, vector<16x128xbf16>, vector<40x128xf32> -> vector<40x128xf32>
    %45 = vector.broadcast %43 : vector<1x128xf32> to vector<40x128xf32>
    %46 = arith.addf %44, %45 : vector<40x128xf32>
    %c0_35 = arith.constant 0 : index
    %c0_36 = arith.constant 0 : index
    %47 = vector.load %arg14[%c0_35, %c0_36] : memref<40x128xf32, #tpu.memory_space<vmem>>, vector<40x128xf32>
    tpu.vector_store %arg14[%c0_35, %c0_36], %46 {strides = array<i32>} : memref<40x128xf32, #tpu.memory_space<vmem>>, vector<40x128xf32>,
    return
  }
  func.func @transform_0(%arg0: i32) -> (i32, i32) {
    %c0_i32 = arith.constant 0 : i32
    %c0_i32_0 = arith.constant 0 : i32
    return %arg0, %c0_i32 : i32, i32
  }
  func.func @transform_1(%arg0: i32) -> (i32, i32) {
    %c0_i32 = arith.constant 0 : i32
    %c0_i32_0 = arith.constant 0 : i32
    %c0_i32_1 = arith.constant 0 : i32
    return %c0_i32, %c0_i32_0 : i32, i32
  }
  func.func @transform_2(%arg0: i32) -> (i32, i32) {
    %c0_i32 = arith.constant 0 : i32
    %c0_i32_0 = arith.constant 0 : i32
    %c0_i32_1 = arith.constant 0 : i32
    return %c0_i32, %c0_i32_0 : i32, i32
  }
  func.func @transform_3(%arg0: i32) -> (i32, i32) {
    %c0_i32 = arith.constant 0 : i32
    %c0_i32_0 = arith.constant 0 : i32
    %c0_i32_1 = arith.constant 0 : i32
    return %c0_i32, %c0_i32_0 : i32, i32
  }
  func.func @transform_4(%arg0: i32) -> (i32, i32) {
    %c0_i32 = arith.constant 0 : i32
    %c0_i32_0 = arith.constant 0 : i32
    %c0_i32_1 = arith.constant 0 : i32
    return %c0_i32, %c0_i32_0 : i32, i32
  }
  func.func @transform_5(%arg0: i32) -> (i32, i32) {
    %c0_i32 = arith.constant 0 : i32
    %c0_i32_0 = arith.constant 0 : i32
    %c0_i32_1 = arith.constant 0 : i32
    return %c0_i32, %c0_i32_0 : i32, i32
  }
  func.func @transform_6(%arg0: i32) -> (i32, i32) {
    %c0_i32 = arith.constant 0 : i32
    %c0_i32_0 = arith.constant 0 : i32
    %c0_i32_1 = arith.constant 0 : i32
    return %c0_i32, %c0_i32_0 : i32, i32
  }
  func.func @transform_7(%arg0: i32) -> (i32, i32) {
    %c0_i32 = arith.constant 0 : i32
    %c0_i32_0 = arith.constant 0 : i32
    %c0_i32_1 = arith.constant 0 : i32
    return %c0_i32, %c0_i32_0 : i32, i32
  }
  func.func @transform_8(%arg0: i32) -> (i32, i32) {
    %c0_i32 = arith.constant 0 : i32
    %c0_i32_0 = arith.constant 0 : i32
    %c0_i32_1 = arith.constant 0 : i32
    return %c0_i32, %c0_i32_0 : i32, i32
  }
  func.func @transform_9(%arg0: i32) -> (i32, i32) {
    %c0_i32 = arith.constant 0 : i32
    %c0_i32_0 = arith.constant 0 : i32
    %c0_i32_1 = arith.constant 0 : i32
    return %c0_i32, %c0_i32_0 : i32, i32
  }
  func.func @transform_10(%arg0: i32) -> (i32, i32) {
    %c0_i32 = arith.constant 0 : i32
    %c0_i32_0 = arith.constant 0 : i32
    %c0_i32_1 = arith.constant 0 : i32
    return %c0_i32, %c0_i32_0 : i32, i32
  }
  func.func @transform_11(%arg0: i32) -> (i32, i32) {
    %c0_i32 = arith.constant 0 : i32
    %c0_i32_0 = arith.constant 0 : i32
    %c0_i32_1 = arith.constant 0 : i32
    return %c0_i32, %c0_i32_0 : i32, i32
  }
  func.func @transform_12(%arg0: i32) -> (i32, i32) {
    %c0_i32 = arith.constant 0 : i32
    %c0_i32_0 = arith.constant 0 : i32
    %c0_i32_1 = arith.constant 0 : i32
    return %c0_i32, %c0_i32_0 : i32, i32
  }
  func.func @transform_13(%arg0: i32) -> (i32, i32) {
    %c0_i32 = arith.constant 0 : i32
    %c0_i32_0 = arith.constant 0 : i32
    return %arg0, %c0_i32 : i32, i32
  }
}

module attributes {stable_mosaic.version = 11 : i64} {
  func.func @mlp_kernel(%arg0: i32, %arg1: memref<40x1024xf32, #tpu.memory_space<vmem>>, %arg2: memref<1024x32xbf16, #tpu.memory_space<vmem>>, %arg3: memref<1x32xf32, #tpu.memory_space<vmem>>, %arg4: memref<32x64xbf16, #tpu.memory_space<vmem>>, %arg5: memref<1x64xf32, #tpu.memory_space<vmem>>, %arg6: memref<64x64xbf16, #tpu.memory_space<vmem>>, %arg7: memref<1x64xf32, #tpu.memory_space<vmem>>, %arg8: memref<64x32xbf16, #tpu.memory_space<vmem>>, %arg9: memref<1x32xf32, #tpu.memory_space<vmem>>, %arg10: memref<32x16xbf16, #tpu.memory_space<vmem>>, %arg11: memref<1x16xf32, #tpu.memory_space<vmem>>, %arg12: memref<16x128xbf16, #tpu.memory_space<vmem>>, %arg13: memref<1x128xf32, #tpu.memory_space<vmem>>, %arg14: memref<40x128xf32, #tpu.memory_space<vmem>>) attributes {dimension_semantics = [#tpu.dimension_semantics<parallel>], iteration_bounds = array<i64: 1>, scalar_prefetch = 0 : i64, scratch_operands = 0 : i64, tpu.core_type = #tpu.core_type<tc>, window_params = [{transform_indices = @transform_0, window_bounds = array<i64: 40, 1024>}, {pipeline_mode = #tpu.pipeline_mode<synchronous>, transform_indices = @transform_1, window_bounds = array<i64: 1024, 32>}, {pipeline_mode = #tpu.pipeline_mode<synchronous>, transform_indices = @transform_2, window_bounds = array<i64: 1, 32>}, {pipeline_mode = #tpu.pipeline_mode<synchronous>, transform_indices = @transform_3, window_bounds = array<i64: 32, 64>}, {pipeline_mode = #tpu.pipeline_mode<synchronous>, transform_indices = @transform_4, window_bounds = array<i64: 1, 64>}, {pipeline_mode = #tpu.pipeline_mode<synchronous>, transform_indices = @transform_5, window_bounds = array<i64: 64, 64>}, {pipeline_mode = #tpu.pipeline_mode<synchronous>, transform_indices = @transform_6, window_bounds = array<i64: 1, 64>}, {pipeline_mode = #tpu.pipeline_mode<synchronous>, transform_indices = @transform_7, window_bounds = array<i64: 64, 32>}, {pipeline_mode = #tpu.pipeline_mode<synchronous>, transform_indices = @transform_8, window_bounds = array<i64: 1, 32>}, {pipeline_mode = #tpu.pipeline_mode<synchronous>, transform_indices = @transform_9, window_bounds = array<i64: 32, 16>}, {pipeline_mode = #tpu.pipeline_mode<synchronous>, transform_indices = @transform_10, window_bounds = array<i64: 1, 16>}, {pipeline_mode = #tpu.pipeline_mode<synchronous>, transform_indices = @transform_11, window_bounds = array<i64: 16, 128>}, {pipeline_mode = #tpu.pipeline_mode<synchronous>, transform_indices = @transform_12, window_bounds = array<i64: 1, 128>}, {transform_indices = @transform_13, window_bounds = array<i64: 40, 128>}]} {
    %c0 = arith.constant 0 : index
    %c0_0 = arith.constant 0 : index
    %0 = vector.load %arg1[%c0, %c0_0] : memref<40x1024xf32, #tpu.memory_space<vmem>>, vector<40x1024xf32>
    %1 = arith.truncf %0 : vector<40x1024xf32> to vector<40x1024xbf16>
    %c0_1 = arith.constant 0 : index
    %c0_2 = arith.constant 0 : index
    %2 = vector.load %arg2[%c0_1, %c0_2] : memref<1024x32xbf16, #tpu.memory_space<vmem>>, vector<1024x32xbf16>
    %c0_3 = arith.constant 0 : index
    %c0_4 = arith.constant 0 : index
    %3 = vector.load %arg3[%c0_3, %c0_4] : memref<1x32xf32, #tpu.memory_space<vmem>>, vector<1x32xf32>
    %cst = arith.constant dense<0.000000e+00> : vector<40x32xf32>
    %4 = tpu.matmul %1, %2, %cst {dimension_numbers = #tpu.dot_dimension_numbers<[1], [0], [0], [1], [0, 0, 1, 1], [], []>} : vector<40x1024xbf16>, vector<1024x32xbf16>, vector<40x32xf32> -> vector<40x32xf32>
    %5 = vector.broadcast %3 : vector<1x32xf32> to vector<40x32xf32>
    %6 = arith.addf %4, %5 : vector<40x32xf32>
    %cst_5 = arith.constant 0.000000e+00 : f32
    %7 = vector.broadcast %cst_5 : f32 to vector<40x32xf32>
    %8 = arith.maximumf %6, %7 : vector<40x32xf32>
    %9 = arith.truncf %8 : vector<40x32xf32> to vector<40x32xbf16>
    %c0_6 = arith.constant 0 : index
    %c0_7 = arith.constant 0 : index
    %10 = vector.load %arg4[%c0_6, %c0_7] : memref<32x64xbf16, #tpu.memory_space<vmem>>, vector<32x64xbf16>
    %c0_8 = arith.constant 0 : index
    %c0_9 = arith.constant 0 : index
    %11 = vector.load %arg5[%c0_8, %c0_9] : memref<1x64xf32, #tpu.memory_space<vmem>>, vector<1x64xf32>
    %cst_10 = arith.constant dense<0.000000e+00> : vector<40x64xf32>
    %12 = tpu.matmul %9, %10, %cst_10 {dimension_numbers = #tpu.dot_dimension_numbers<[1], [0], [0], [1], [0, 0, 1, 1], [], []>} : vector<40x32xbf16>, vector<32x64xbf16>, vector<40x64xf32> -> vector<40x64xf32>
    %13 = vector.broadcast %11 : vector<1x64xf32> to vector<40x64xf32>
    %14 = arith.addf %12, %13 : vector<40x64xf32>
    %cst_11 = arith.constant 0.000000e+00 : f32
    %15 = vector.broadcast %cst_11 : f32 to vector<40x64xf32>
    %16 = arith.maximumf %14, %15 : vector<40x64xf32>
    %17 = arith.truncf %16 : vector<40x64xf32> to vector<40x64xbf16>
    %c0_12 = arith.constant 0 : index
    %c0_13 = arith.constant 0 : index
    %18 = vector.load %arg6[%c0_12, %c0_13] : memref<64x64xbf16, #tpu.memory_space<vmem>>, vector<64x64xbf16>
    %c0_14 = arith.constant 0 : index
    %c0_15 = arith.constant 0 : index
    %19 = vector.load %arg7[%c0_14, %c0_15] : memref<1x64xf32, #tpu.memory_space<vmem>>, vector<1x64xf32>
    %cst_16 = arith.constant dense<0.000000e+00> : vector<40x64xf32>
    %20 = tpu.matmul %17, %18, %cst_16 {dimension_numbers = #tpu.dot_dimension_numbers<[1], [0], [0], [1], [0, 0, 1, 1], [], []>} : vector<40x64xbf16>, vector<64x64xbf16>, vector<40x64xf32> -> vector<40x64xf32>
    %21 = vector.broadcast %19 : vector<1x64xf32> to vector<40x64xf32>
    %22 = arith.addf %20, %21 : vector<40x64xf32>
    %cst_17 = arith.constant 0.000000e+00 : f32
    %23 = vector.broadcast %cst_17 : f32 to vector<40x64xf32>
    %24 = arith.maximumf %22, %23 : vector<40x64xf32>
    %25 = arith.truncf %24 : vector<40x64xf32> to vector<40x64xbf16>
    %c0_18 = arith.constant 0 : index
    %c0_19 = arith.constant 0 : index
    %26 = vector.load %arg8[%c0_18, %c0_19] : memref<64x32xbf16, #tpu.memory_space<vmem>>, vector<64x32xbf16>
    %c0_20 = arith.constant 0 : index
    %c0_21 = arith.constant 0 : index
    %27 = vector.load %arg9[%c0_20, %c0_21] : memref<1x32xf32, #tpu.memory_space<vmem>>, vector<1x32xf32>
    %cst_22 = arith.constant dense<0.000000e+00> : vector<40x32xf32>
    %28 = tpu.matmul %25, %26, %cst_22 {dimension_numbers = #tpu.dot_dimension_numbers<[1], [0], [0], [1], [0, 0, 1, 1], [], []>} : vector<40x64xbf16>, vector<64x32xbf16>, vector<40x32xf32> -> vector<40x32xf32>
    %29 = vector.broadcast %27 : vector<1x32xf32> to vector<40x32xf32>
    %30 = arith.addf %28, %29 : vector<40x32xf32>
    %cst_23 = arith.constant 0.000000e+00 : f32
    %31 = vector.broadcast %cst_23 : f32 to vector<40x32xf32>
    %32 = arith.maximumf %30, %31 : vector<40x32xf32>
    %33 = arith.truncf %32 : vector<40x32xf32> to vector<40x32xbf16>
    %c0_24 = arith.constant 0 : index
    %c0_25 = arith.constant 0 : index
    %34 = vector.load %arg10[%c0_24, %c0_25] : memref<32x16xbf16, #tpu.memory_space<vmem>>, vector<32x16xbf16>
    %c0_26 = arith.constant 0 : index
    %c0_27 = arith.constant 0 : index
    %35 = vector.load %arg11[%c0_26, %c0_27] : memref<1x16xf32, #tpu.memory_space<vmem>>, vector<1x16xf32>
    %cst_28 = arith.constant dense<0.000000e+00> : vector<40x16xf32>
    %36 = tpu.matmul %33, %34, %cst_28 {dimension_numbers = #tpu.dot_dimension_numbers<[1], [0], [0], [1], [0, 0, 1, 1], [], []>} : vector<40x32xbf16>, vector<32x16xbf16>, vector<40x16xf32> -> vector<40x16xf32>
    %37 = vector.broadcast %35 : vector<1x16xf32> to vector<40x16xf32>
    %38 = arith.addf %36, %37 : vector<40x16xf32>
    %cst_29 = arith.constant 0.000000e+00 : f32
    %39 = vector.broadcast %cst_29 : f32 to vector<40x16xf32>
    %40 = arith.maximumf %38, %39 : vector<40x16xf32>
    %41 = arith.truncf %40 : vector<40x16xf32> to vector<40x16xbf16>
    %c0_30 = arith.constant 0 : index
    %c0_31 = arith.constant 0 : index
    %42 = vector.load %arg12[%c0_30, %c0_31] : memref<16x128xbf16, #tpu.memory_space<vmem>>, vector<16x128xbf16>
    %c0_32 = arith.constant 0 : index
    %c0_33 = arith.constant 0 : index
    %43 = vector.load %arg13[%c0_32, %c0_33] : memref<1x128xf32, #tpu.memory_space<vmem>>, vector<1x128xf32>
    %cst_34 = arith.constant dense<0.000000e+00> : vector<40x128xf32>
    %44 = tpu.matmul %41, %42, %cst_34 {dimension_numbers = #tpu.dot_dimension_numbers<[1], [0], [0], [1], [0, 0, 1, 1], [], []>} : vector<40x16xbf16>, vector<16x128xbf16>, vector<40x128xf32> -> vector<40x128xf32>
    %45 = vector.broadcast %43 : vector<1x128xf32> to vector<40x128xf32>
    %46 = arith.addf %44, %45 : vector<40x128xf32>
    %c0_35 = arith.constant 0 : index
    %c0_36 = arith.constant 0 : index
    %47 = vector.load %arg14[%c0_35, %c0_36] : memref<40x128xf32, #tpu.memory_space<vmem>>, vector<40x128xf32>
    tpu.vector_store %arg14[%c0_35, %c0_36], %46 {strides = array<i32>} : memref<40x128xf32, #tpu.memory_space<vmem>>, vector<40x128xf32>,
    return
  }
  func.func @transform_0(%arg0: i32) -> (i32, i32) {
    %c0_i32 = arith.constant 0 : i32
    %c0_i32_0 = arith.constant 0 : i32
    return %arg0, %c0_i32 : i32, i32
  }
  func.func @transform_1(%arg0: i32) -> (i32, i32) {
    %c0_i32 = arith.constant 0 : i32
    %c0_i32_0 = arith.constant 0 : i32
    %c0_i32_1 = arith.constant 0 : i32
    return %c0_i32, %c0_i32_0 : i32, i32
  }
  func.func @transform_2(%arg0: i32) -> (i32, i32) {
    %c0_i32 = arith.constant 0 : i32
    %c0_i32_0 = arith.constant 0 : i32
    %c0_i32_1 = arith.constant 0 : i32
    return %c0_i32, %c0_i32_0 : i32, i32
  }
  func.func @transform_3(%arg0: i32) -> (i32, i32) {
    %c0_i32 = arith.constant 0 : i32
    %c0_i32_0 = arith.constant 0 : i32
    %c0_i32_1 = arith.constant 0 : i32
    return %c0_i32, %c0_i32_0 : i32, i32
  }
  func.func @transform_4(%arg0: i32) -> (i32, i32) {
    %c0_i32 = arith.constant 0 : i32
    %c0_i32_0 = arith.constant 0 : i32
    %c0_i32_1 = arith.constant 0 : i32
    return %c0_i32, %c0_i32_0 : i32, i32
  }
  func.func @transform_5(%arg0: i32) -> (i32, i32) {
    %c0_i32 = arith.constant 0 : i32
    %c0_i32_0 = arith.constant 0 : i32
    %c0_i32_1 = arith.constant 0 : i32
    return %c0_i32, %c0_i32_0 : i32, i32
  }
  func.func @transform_6(%arg0: i32) -> (i32, i32) {
    %c0_i32 = arith.constant 0 : i32
    %c0_i32_0 = arith.constant 0 : i32
    %c0_i32_1 = arith.constant 0 : i32
    return %c0_i32, %c0_i32_0 : i32, i32
  }
  func.func @transform_7(%arg0: i32) -> (i32, i32) {
    %c0_i32 = arith.constant 0 : i32
    %c0_i32_0 = arith.constant 0 : i32
    %c0_i32_1 = arith.constant 0 : i32
    return %c0_i32, %c0_i32_0 : i32, i32
  }
  func.func @transform_8(%arg0: i32) -> (i32, i32) {
    %c0_i32 = arith.constant 0 : i32
    %c0_i32_0 = arith.constant 0 : i32
    %c0_i32_1 = arith.constant 0 : i32
    return %c0_i32, %c0_i32_0 : i32, i32
  }
  func.func @transform_9(%arg0: i32) -> (i32, i32) {
    %c0_i32 = arith.constant 0 : i32
    %c0_i32_0 = arith.constant 0 : i32
    %c0_i32_1 = arith.constant 0 : i32
    return %c0_i32, %c0_i32_0 : i32, i32
  }
  func.func @transform_10(%arg0: i32) -> (i32, i32) {
    %c0_i32 = arith.constant 0 : i32
    %c0_i32_0 = arith.constant 0 : i32
    %c0_i32_1 = arith.constant 0 : i32
    return %c0_i32, %c0_i32_0 : i32, i32
  }
  func.func @transform_11(%arg0: i32) -> (i32, i32) {
    %c0_i32 = arith.constant 0 : i32
    %c0_i32_0 = arith.constant 0 : i32
    %c0_i32_1 = arith.constant 0 : i32
    return %c0_i32, %c0_i32_0 : i32, i32
  }
  func.func @transform_12(%arg0: i32) -> (i32, i32) {
    %c0_i32 = arith.constant 0 : i32
    %c0_i32_0 = arith.constant 0 : i32
    %c0_i32_1 = arith.constant 0 : i32
    return %c0_i32, %c0_i32_0 : i32, i32
  }
  func.func @transform_13(%arg0: i32) -> (i32, i32) {
    %c0_i32 = arith.constant 0 : i32
    %c0_i32_0 = arith.constant 0 : i32
    return %arg0, %c0_i32 : i32, i32
  }
}

</mosaic_0001>

<bundles_post_ra>
// kernel: tpu_custom_call.1
= control target key start
LH: loop header
LB: loop body
LE: loop exit
PB: predicated region body
PF: predicated region fallthrough
CT: control target
= control target key end

     0   :  { %s2355_s0 = inlined_call_operand.vmem [shape: f32[40,1024], index: 0, kind: input, shape index: {}]   ;;  %s2356_s1 = inlined_call_operand.vmem [shape: bf16[1024,32], index: 1, kind: input, shape index: {}]   ;;  %s2357_s2 = inlined_call_operand.vmem [shape: f32[1,32], index: 2, kind: input, shape index: {}]   ;;  %s2358_s3 = inlined_call_operand.vmem [shape: bf16[32,64], index: 3, kind: input, shape index: {}]   ;;  %s2359_s4 = inlined_call_operand.vmem [shape: f32[1,64], index: 4, kind: input, shape index: {}]   ;;  %s2360_s5 = inlined_call_operand.vmem [shape: bf16[64,64], index: 5, kind: input, shape index: {}]   ;;  %s2361_s6 = inlined_call_operand.vmem [shape: f32[1,64], index: 6, kind: input, shape index: {}]   ;;  %s2362_s7 = inlined_call_operand.vmem [shape: bf16[64,32], index: 7, kind: input, shape index: {}]   ;;  %s2363_s8 = inlined_call_operand.vmem [shape: f32[1,32], index: 8, kind: input, shape index: {}]   ;;  %s2364_s9 = inlined_call_operand.vmem [shape: bf16[32,16], index: 9, kind: input, shape index: {}]   ;;  %s2365_s10 = inlined_call_operand.vmem [shape: f32[1,16], index: 10, kind: input, shape index: {}]   ;;  %s2366_s11 = inlined_call_operand.vmem [shape: bf16[16,128], index: 11, kind: input, shape index: {}]   ;;  %s2367_s12 = inlined_call_operand.vmem [shape: f32[1,128], index: 12, kind: input, shape index: {}]   ;;  %s2368_s13 = inlined_call_operand.hbm [shape: f32[40,128], index: 13, kind: output, shape index: {}]  }
   0x1   :  { %v1738_v0 = vld [vmem:[%s2356_s1 + $0x40] sm:$0xff]   ;;  %v1742_v4 = vld [vmem:[%s2356_s1 + $0x48] sm:$0xff]   ;;  %v1746_v8 = vld [vmem:[%s2356_s1 + $0x50] sm:$0xff]  }
   0x2   :  { %v1739_v1 = vld [vmem:[%s2356_s1 + $0xc0] sm:$0xff]   ;;  %1479 = vmatprep.subr.bf16.mxu0 %v1738_v0  ;;  %v1743_v5 = vld [vmem:[%s2356_s1 + $0xc8] sm:$0xff]   ;;  %v1747_v9 = vld [vmem:[%s2356_s1 + $0xd0] sm:$0xff]  }
   0x3   :  { %v1740_v2 = vld [vmem:[%s2356_s1] sm:$0xff]   ;;  %1513 = vmatprep.subr.bf16.mxu1 %v1739_v1  ;;  %v1744_v6 = vld [vmem:[%s2356_s1 + $0x8] sm:$0xff]   ;;  %v1748_v10 = vld [vmem:[%s2356_s1 + $0x10] sm:$0xff]  }
   0x4   :  { %v1741_v3 = vld [vmem:[%s2356_s1 + $0x80] sm:$0xff]   ;;  %1480 = vmatpush3.bf16.msra.mxu0 %v1740_v2  ;;  %v1745_v7 = vld [vmem:[%s2356_s1 + $0x88] sm:$0xff]   ;;  %v1749_v11 = vld [vmem:[%s2356_s1 + $0x90] sm:$0xff]  }
   0x5   :  { %1514 = vmatpush3.bf16.msra.mxu1 %v1741_v3  ;;  %1481 = vmatprep.subr.bf16.mxu0 %v1742_v4  ;;  %v1750_v12 = vld [vmem:[%s2356_s1 + $0x58] sm:$0xff]   ;;  %v1754_v16 = vld [vmem:[%s2356_s1 + $0x60] sm:$0xff]   ;;  %v1758_v20 = vld [vmem:[%s2356_s1 + $0x68] sm:$0xff]  }
   0x6   :  { %1515 = vmatprep.subr.bf16.mxu1 %v1743_v5  ;;  %v1751_v13 = vld [vmem:[%s2356_s1 + $0xd8] sm:$0xff]   ;;  %v1755_v17 = vld [vmem:[%s2356_s1 + $0xe0] sm:$0xff]   ;;  %v1759_v21 = vld [vmem:[%s2356_s1 + $0xe8] sm:$0xff]  }
   0x7   :  { %v1752_v14 = vld [vmem:[%s2356_s1 + $0x18] sm:$0xff]   ;;  %v1756_v18 = vld [vmem:[%s2356_s1 + $0x20] sm:$0xff]   ;;  %v1760_v22 = vld [vmem:[%s2356_s1 + $0x28] sm:$0xff]  }
   0x8   :  { %1482 = vmatpush3.bf16.msra.mxu0 %v1744_v6  ;;  %v1753_v15 = vld [vmem:[%s2356_s1 + $0x98] sm:$0xff]   ;;  %v1757_v19 = vld [vmem:[%s2356_s1 + $0xa0] sm:$0xff]   ;;  %v1761_v23 = vld [vmem:[%s2356_s1 + $0xa8] sm:$0xff]  }
   0x9   :  { %1516 = vmatpush3.bf16.msra.mxu1 %v1745_v7  ;;  %1483 = vmatprep.subr.bf16.mxu0 %v1746_v8  ;;  %v1762_v24 = vld [vmem:[%s2356_s1 + $0x70] sm:$0xff]   ;;  %v1766_v28 = vld [vmem:[%s2356_s1 + $0x78] sm:$0xff]   ;;  %v47_v32 = vld [vmem:[%s2355_s0 + $0x8] sm:$0xff] }
   0xa   :  { %1517 = vmatprep.subr.bf16.mxu1 %v1747_v9  ;;  %v1763_v25 = vld [vmem:[%s2356_s1 + $0xf0] sm:$0xff]   ;;  %v1767_v29 = vld [vmem:[%s2356_s1 + $0xf8] sm:$0xff]   ;;  %v55_v33 = vld [vmem:[%s2355_s0 + $0x48] sm:$0xff] }
   0xb   :  { %v1764_v26 = vld [vmem:[%s2356_s1 + $0x30] sm:$0xff]   ;;  %v1768_v30 = vld [vmem:[%s2356_s1 + $0x38] sm:$0xff]   ;;  %v87_v35 = vpack.c.bf16 %v55_v33, %v47_v32  ;;  %v46_v37 = vld [vmem:[%s2355_s0] sm:$0xff] }
   0xc   :  { %1484 = vmatpush3.bf16.msra.mxu0 %v1748_v10  ;;  %v1765_v27 = vld [vmem:[%s2356_s1 + $0xb0] sm:$0xff]   ;;  %v1769_v31 = vld [vmem:[%s2356_s1 + $0xb8] sm:$0xff]   ;;  %v54_v38 = vld [vmem:[%s2355_s0 + $0x40] sm:$0xff] }
   0xd   :  { %1518 = vmatpush3.bf16.msra.mxu1 %v1749_v11  ;;  %1485 = vmatprep.subr.bf16.mxu0 %v1750_v12  ;;  %v49_v34 = vld [vmem:[%s2355_s0 + $0x18] sm:$0xff]  ;;  %v86_v40 = vpack.c.bf16 %v54_v38, %v46_v37  ;;  %v48_v41 = vld [vmem:[%s2355_s0 + $0x10] sm:$0xff]  ;;  %v1770_v44 = vld [vmem:[%s2356_s1 + $0x140] sm:$0xff]  }
   0xe   :  { %1519 = vmatprep.subr.bf16.mxu1 %v1751_v13  ;;  %v57_v36 = vld [vmem:[%s2355_s0 + $0x58] sm:$0xff]  ;;  %v56_v42 = vld [vmem:[%s2355_s0 + $0x50] sm:$0xff]  ;;  %661 = vmatprep.mubr.bf16.mxu0 %v87_v35  ;;  %v1771_v45 = vld [vmem:[%s2356_s1 + $0x1c0] sm:$0xff]  }
   0xf   :  { %v89_v39 = vpack.c.bf16 %v57_v36, %v49_v34  ;;  %v88_v43 = vpack.c.bf16 %v56_v42, %v48_v41  ;;  %v1772_v46 = vld [vmem:[%s2356_s1 + $0x100] sm:$0xff]   ;;  %v1774_v48 = vld [vmem:[%s2356_s1 + $0x148] sm:$0xff]   ;;  %v1778_v52 = vld [vmem:[%s2356_s1 + $0x150] sm:$0xff]  }
  0x10   :  { %1486 = vmatpush3.bf16.msra.mxu0 %v1752_v14  ;;  %v1773_v47 = vld [vmem:[%s2356_s1 + $0x180] sm:$0xff]   ;;  %v1775_v49 = vld [vmem:[%s2356_s1 + $0x1c8] sm:$0xff]   ;;  %v1779_v53 = vld [vmem:[%s2356_s1 + $0x1d0] sm:$0xff]  }
  0x11   :  { %1520 = vmatpush3.bf16.msra.mxu1 %v1753_v15  ;;  %1487 = vmatprep.subr.bf16.mxu0 %v1754_v16  ;;  %v1776_v50 = vld [vmem:[%s2356_s1 + $0x108] sm:$0xff]   ;;  %v1780_v54 = vld [vmem:[%s2356_s1 + $0x110] sm:$0xff]   ;;  %v1782_v59 = vld [vmem:[%s2356_s1 + $0x158] sm:$0xff]  }
  0x12   :  { %1521 = vmatprep.subr.bf16.mxu1 %v1755_v17  ;;  %717 = vmatprep.mubr.bf16.mxu1 %v89_v39  ;;  %v1777_v51 = vld [vmem:[%s2356_s1 + $0x188] sm:$0xff]   ;;  %v1781_v55 = vld [vmem:[%s2356_s1 + $0x190] sm:$0xff]   ;;  %v1783_v60 = vld [vmem:[%s2356_s1 + $0x1d8] sm:$0xff]  }
  0x13   :  { %v63_v56 = vld [vmem:[%s2355_s0 + $0x88] sm:$0xff]  ;;  %v62_v61 = vld [vmem:[%s2355_s0 + $0x80] sm:$0xff]  ;;  %v1784_v0 = vld [vmem:[%s2356_s1 + $0x118] sm:$0xff]  }
  0x14   :  { %1488 = vmatpush3.bf16.msra.mxu0 %v1756_v18  ;;  %v71_v57 = vld [vmem:[%s2355_s0 + $0xc8] sm:$0xff]  ;;  %v70_v62 = vld [vmem:[%s2355_s0 + $0xc0] sm:$0xff]  ;;  %v1785_v1 = vld [vmem:[%s2356_s1 + $0x198] sm:$0xff]  }
  0x15   :  { %1522 = vmatpush3.bf16.msra.mxu1 %v1757_v19  ;;  %1489 = vmatprep.subr.bf16.mxu0 %v1758_v20  ;;  %v95_v58 = vpack.c.bf16 %v71_v57, %v63_v56  ;;  %v94_v63 = vpack.c.bf16 %v70_v62, %v62_v61  ;;  %v65_v2 = vld [vmem:[%s2355_s0 + $0x98] sm:$0xff]  ;;  %v64_v4 = vld [vmem:[%s2355_s0 + $0x90] sm:$0xff]  ;;  %v1786_v8 = vld [vmem:[%s2356_s1 + $0x160] sm:$0xff]  }
  0x16   :  { %1523 = vmatprep.subr.bf16.mxu1 %v1759_v21  ;;  %v73_v3 = vld [vmem:[%s2355_s0 + $0xd8] sm:$0xff]  ;;  %v72_v6 = vld [vmem:[%s2355_s0 + $0xd0] sm:$0xff]  ;;  %v1787_v9 = vld [vmem:[%s2356_s1 + $0x1e0] sm:$0xff]  }
  0x17   :  { %v97_v5 = vpack.c.bf16 %v73_v3, %v65_v2  ;;  %v96_v7 = vpack.c.bf16 %v72_v6, %v64_v4  ;;  %v1788_v10 = vld [vmem:[%s2356_s1 + $0x120] sm:$0xff]   ;;  %v79_v12 = vld [vmem:[%s2355_s0 + $0x108] sm:$0xff]  ;;  %v81_v20 = vld [vmem:[%s2355_s0 + $0x118] sm:$0xff] }
  0x18   :  { %1490 = vmatpush3.bf16.msra.mxu0 %v1760_v22  ;;  %v1789_v11 = vld [vmem:[%s2356_s1 + $0x1a0] sm:$0xff]   ;;  %v103_v13 = vpack.c.bf16 %v79_v12, %v79_v12  ;;  %v1790_v14 = vld [vmem:[%s2356_s1 + $0x168] sm:$0xff]   ;;  %v80_v21 = vld [vmem:[%s2355_s0 + $0x110] sm:$0xff]  ;;  %v105_v22 = vpack.c.bf16 %v81_v20, %v81_v20 }
  0x19   :  { %1524 = vmatpush3.bf16.msra.mxu1 %v1761_v23  ;;  %1491 = vmatprep.subr.bf16.mxu0 %v1762_v24  ;;  %v1791_v15 = vld [vmem:[%s2356_s1 + $0x1e8] sm:$0xff]   ;;  %v78_v16 = vld [vmem:[%s2355_s0 + $0x100] sm:$0xff]  ;;  %v104_v23 = vpack.c.bf16 %v80_v21, %v80_v21  ;;  %v1794_v24 = vld [vmem:[%s2356_s1 + $0x170] sm:$0xff]  }
  0x1a   :  { %1525 = vmatprep.subr.bf16.mxu1 %v1763_v25  ;;  %v102_v17 = vpack.c.bf16 %v78_v16, %v78_v16  ;;  %v1792_v18 = vld [vmem:[%s2356_s1 + $0x128] sm:$0xff]   ;;  %v1795_v25 = vld [vmem:[%s2356_s1 + $0x1f0] sm:$0xff]   ;;  %v53_v34 = vld [vmem:[%s2355_s0 + $0x38] sm:$0xff] }
  0x1b   :  { %v1793_v19 = vld [vmem:[%s2356_s1 + $0x1a8] sm:$0xff]   ;;  %v61_v35 = vld [vmem:[%s2355_s0 + $0x78] sm:$0xff]  ;;  %v50_v38 = vld [vmem:[%s2355_s0 + $0x20] sm:$0xff] }
  0x1c   :  { %1492 = vmatpush3.bf16.msra.mxu0 %v1764_v26  ;;  %v1796_v26 = vld [vmem:[%s2356_s1 + $0x130] sm:$0xff]   ;;  %v51_v32 = vld [vmem:[%s2355_s0 + $0x28] sm:$0xff]  ;;  %v93_v37 = vpack.c.bf16 %v61_v35, %v53_v34  ;;  %v58_v39 = vld [vmem:[%s2355_s0 + $0x60] sm:$0xff] }
  0x1d   :  { %1526 = vmatpush3.bf16.msra.mxu1 %v1765_v27  ;;  %1493 = vmatprep.subr.bf16.mxu0 %v1766_v28  ;;  %v1797_v27 = vld [vmem:[%s2356_s1 + $0x1b0] sm:$0xff]   ;;  %v1798_v28 = vld [vmem:[%s2356_s1 + $0x178] sm:$0xff]   ;;  %v59_v33 = vld [vmem:[%s2355_s0 + $0x68] sm:$0xff]  ;;  %v90_v41 = vpack.c.bf16 %v58_v39, %v50_v38 }
  0x1e   :  { %1527 = vmatprep.subr.bf16.mxu1 %v1767_v29  ;;  %v1799_v29 = vld [vmem:[%s2356_s1 + $0x1f8] sm:$0xff]   ;;  %v91_v36 = vpack.c.bf16 %v59_v33, %v51_v32  ;;  %v60_v42 = vld [vmem:[%s2355_s0 + $0x70] sm:$0xff] }
  0x1f   :  { %v84_v61 = vld [vmem:[%s2355_s0 + $0x130] sm:$0xff] }
  0x20   :  { %1494 = vmatpush3.bf16.msra.mxu0 %v1768_v30  ;;  %v1800_v30 = vld [vmem:[%s2356_s1 + $0x138] sm:$0xff]  }
  0x21   :  { %1528 = vmatpush3.bf16.msra.mxu1 %v1769_v31  ;;  %1547 = vmatprep.subr.bf16.mxu0 %v1770_v44  ;;  %v1801_v31 = vld [vmem:[%s2356_s1 + $0x1b8] sm:$0xff]   ;;  %v75_v44 = vld [vmem:[%s2355_s0 + $0xe8] sm:$0xff] }
  0x22   :  { %1581 = vmatprep.subr.bf16.mxu1 %v1771_v45 }
  0x23   :  { %662 = vmatmul.mubr.bf16.vlgmr.msra.gmra.mrb[0].mxu0 %v86_v40  ;;  %v52_v40 = vld [vmem:[%s2355_s0 + $0x30] sm:$0xff] }
  0x24   :  { %718 = vmatmul.mubr.bf16.vlgmr.msra.gmra.mrb[0].mxu1 %v88_v43  ;;  %1548 = vmatpush3.bf16.msra.mxu0 %v1772_v46  ;;  %v67_v43 = vld [vmem:[%s2355_s0 + $0xa8] sm:$0xff]  ;;  %v92_v45 = vpack.c.bf16 %v60_v42, %v52_v40 }
  0x25   :  { %1582 = vmatpush3.bf16.msra.mxu1 %v1773_v47  ;;  %1549 = vmatprep.subr.bf16.mxu0 %v1774_v48  ;;  %v99_v46 = vpack.c.bf16 %v75_v44, %v67_v43  ;;  %v69_v47 = vld [vmem:[%s2355_s0 + $0xb8] sm:$0xff] }
  0x26   :  { %1583 = vmatprep.subr.bf16.mxu1 %v1775_v49  ;;  %669 = vmatprep.mubr.bf16.mxu0 %v95_v58  ;;  %v77_v48 = vld [vmem:[%s2355_s0 + $0xf8] sm:$0xff] }
  0x27   :  { %725 = vmatprep.mubr.bf16.mxu1 %v97_v5  ;;  %v101_v49 = vpack.c.bf16 %v77_v48, %v69_v47 }
  0x28   :  { %1550 = vmatpush3.bf16.msra.mxu0 %v1776_v50  ;;  %v66_v50 = vld [vmem:[%s2355_s0 + $0xa0] sm:$0xff] }
  0x29   :  { %1584 = vmatpush3.bf16.msra.mxu1 %v1777_v51  ;;  %1551 = vmatprep.subr.bf16.mxu0 %v1778_v52  ;;  %v74_v51 = vld [vmem:[%s2355_s0 + $0xe0] sm:$0xff]  ;;  %v68_v52 = vld [vmem:[%s2355_s0 + $0xb0] sm:$0xff] }
  0x2a   :  { %1585 = vmatprep.subr.bf16.mxu1 %v1779_v53  ;;  %v76_v53 = vld [vmem:[%s2355_s0 + $0xf0] sm:$0xff]  ;;  %v98_v56 = vpack.c.bf16 %v74_v51, %v66_v50 }
  0x2b   :  { %670 = vmatmul.mubr.bf16.gmra.mrb[4].mxu0 %v94_v63  ;;  %v100_v57 = vpack.c.bf16 %v76_v53, %v68_v52 }
  0x2c   :  { %1552 = vmatpush3.bf16.msra.mxu0 %v1780_v54  ;;  %726 = vmatmul.mubr.bf16.gmra.mrb[4].mxu1 %v96_v7  ;;  %v83_v54 = vld [vmem:[%s2355_s0 + $0x128] sm:$0xff] }
  0x2d   :  { %1586 = vmatpush3.bf16.msra.mxu1 %v1781_v55  ;;  %1553 = vmatprep.subr.bf16.mxu0 %v1782_v59  ;;  %v85_v55 = vld [vmem:[%s2355_s0 + $0x138] sm:$0xff]  ;;  %v107_v58 = vpack.c.bf16 %v83_v54, %v83_v54 }
  0x2e   :  { %1587 = vmatprep.subr.bf16.mxu1 %v1783_v60  ;;  %677 = vmatprep.mubr.bf16.mxu0 %v103_v13  ;;  %v109_v59 = vpack.c.bf16 %v85_v55, %v85_v55  ;;  %v82_v60 = vld [vmem:[%s2355_s0 + $0x120] sm:$0xff] }
  0x2f   :  { %733 = vmatprep.mubr.bf16.mxu1 %v105_v22 }
  0x30   :  { %1554 = vmatpush3.bf16.msra.mxu0 %v1784_v0 }
  0x31   :  { %1588 = vmatpush3.bf16.msra.mxu1 %v1785_v1  ;;  %1555 = vmatprep.subr.bf16.mxu0 %v1786_v8 }
  0x32   :  { %1589 = vmatprep.subr.bf16.mxu1 %v1787_v9 }
  0x33   :  { %678 = vmatmul.mubr.bf16.gmra.mrb[8].mxu0 %v102_v17 }
  0x34   :  { %1556 = vmatpush3.bf16.msra.mxu0 %v1788_v10  ;;  %734 = vmatmul.mubr.bf16.gmra.mrb[8].mxu1 %v104_v23 }
  0x35   :  { %1590 = vmatpush3.bf16.msra.mxu1 %v1789_v11  ;;  %1557 = vmatprep.subr.bf16.mxu0 %v1790_v14 }
  0x36   :  { %1591 = vmatprep.subr.bf16.mxu1 %v1791_v15  ;;  %773 = vmatprep.mubr.bf16.mxu0 %v91_v36 }
  0x37   :  { %829 = vmatprep.mubr.bf16.mxu1 %v93_v37 }
  0x38   :  { %1558 = vmatpush3.bf16.msra.mxu0 %v1792_v18 }
  0x39   :  { %1592 = vmatpush3.bf16.msra.mxu1 %v1793_v19  ;;  %1559 = vmatprep.subr.bf16.mxu0 %v1794_v24 }
  0x3a   :  { %1593 = vmatprep.subr.bf16.mxu1 %v1795_v25 }
  0x3c   :  { %1560 = vmatpush3.bf16.msra.mxu0 %v1796_v26 }
  0x3d   :  { %1594 = vmatpush3.bf16.msra.mxu1 %v1797_v27  ;;  %1561 = vmatprep.subr.bf16.mxu0 %v1798_v28 }
  0x3e   :  { %1595 = vmatprep.subr.bf16.mxu1 %v1799_v29 }
  0x40   :  { %1562 = vmatpush3.bf16.msra.mxu0 %v1800_v30 }
  0x41   :  { %1596 = vmatpush3.bf16.msra.mxu1 %v1801_v31 }
  0x43   :  { %774 = vmatmul.mubr.bf16.vlgmr.msra.gmra.mrb[12].mxu0 %v90_v41 }
  0x44   :  { %830 = vmatmul.mubr.bf16.vlgmr.msra.gmra.mrb[12].mxu1 %v92_v45  ;;  %781 = vmatprep.mubr.bf16.mxu0 %v99_v46 }
  0x45   :  { %837 = vmatprep.mubr.bf16.mxu1 %v101_v49 }
  0x4b   :  { %782 = vmatmul.mubr.bf16.gmra.mrb[16].mxu0 %v98_v56 }
  0x4c   :  { %838 = vmatmul.mubr.bf16.gmra.mrb[16].mxu1 %v100_v57  ;;  %789 = vmatprep.mubr.bf16.mxu0 %v107_v58 }
  0x4d   :  { %845 = vmatprep.mubr.bf16.mxu1 %v109_v59 }
  0x4e   :  { %18 = vsyncpa [#allocation3], 0  ;;  %v106_v62 = vpack.c.bf16 %v82_v60, %v82_v60  ;;  %v108_v63 = vpack.c.bf16 %v84_v61, %v84_v61  ;;  %v1839_v0 = vmov 0.0   ;;  %v1802_v1 = vld [vmem:[%s2358_s3] sm:$0xff]   ;;  %v1803_v2 = vld [vmem:[%s2358_s3 + $0x8] sm:$0xff]   ;;  %vm1840_vm0 = vmmov 0  }
  0x4f   :  { %1643 = vmatprep.subr.bf16.mxu0 %v1839_v0  ;;  %1729 = vmatprep.subr.bf16.mxu1 %v1839_v0  ;;  %v1381_v5 = vld [vmem:[%s2357_s2] ss:$0 sm:$0xff]  ;;  %vm884_vm1 = vcmask 261120   ;;  %vm997_vm2 = vcmask 523264   ;;  %vm1294_vm3 = vcmask 130048   ;;  %s1841_s15 = smov [#allocation2]  }
  0x50   :  { %1644 = vmatpush3.bf16.msra.mxu0 %v1802_v1  ;;  %1731 = vmatpush3.bf16.msra.mxu1 %v1802_v1  ;;  %s1370_s16 = sshll.u32 %s1841_s15, 4  ;;  %s1371_s16 = int_to_ptr.vmem [resolvable:$true] %s1370_s16 }
  0x51   :  { %1645 = vmatprep.subr.bf16.mxu0 %v1839_v0  ;;  %1730 = vmatprep.subr.bf16.mxu1 %v1839_v0  ;;  %p1820_p1 = scmp.lt.s32.totalorder %s1371_s16, %s1371_s16 }
  0x53   :  { %790 = vmatmul.mubr.bf16.gmra.mrb[20].mxu0 %v106_v62 }
  0x54   :  { %846 = vmatmul.mubr.bf16.gmra.mrb[20].mxu1 %v108_v63  ;;  %1646 = vmatpush3.bf16.msra.mxu0 %v1803_v2 }
  0x55   :  { %1732 = vmatpush3.bf16.msra.mxu1 %v1803_v2  ;;  %1679 = vmatprep.subr.bf16.mxu0 %v1839_v0 }
  0x56   :  { %1659 = vmatprep.subr.bf16.mxu1 %v1839_v0  ;;  %1647 = vmatprep.mubr.msk.bf16.mxu0 %vm1840_vm0, %v1839_v0 }
  0x57   :  { %1655 = vmatprep.mubr.msk.bf16.mxu1 %vm1840_vm0, %v1839_v0 }
  0xf6   :  { %v1495_v3 = vpop.f32.mrb[0].mxu0 }
  0xf7   :  { %v1529_v4 = vpop.f32.mrb[0].mxu1  ;;  %v1496_v6 = vpop.f32.mrb[1].mxu0 }
  0xf8   :  { %v1497_v7 = vadd.f32 %v1496_v6, %v1495_v3  ;;  %v1530_v8 = vpop.f32.mrb[1].mxu1  ;;  %v1498_v9 = vpop.f32.mrb[2].mxu0 }
  0xf9   :  { %v1531_v10 = vadd.f32 %v1530_v8, %v1529_v4  ;;  %v1532_v11 = vpop.f32.mrb[2].mxu1  ;;  %v1499_v12 = vpop.f32.mrb[3].mxu0 }
  0xfa   :  { %v664_v13 = vadd.f32 %v1497_v7, %v1381_v5  ;;  %v1500_v14 = vadd.f32 %v1499_v12, %v1498_v9  ;;  %v1533_v15 = vpop.f32.mrb[3].mxu1 }
  0xfb   :  { %v1534_v16 = vadd.f32 %v1533_v15, %v1532_v11 }
  0xfc   :  { %v720_v17 = vadd.f32 %v1531_v10, %v664_v13  ;;  %v667_v18 = vadd.f32 %v1500_v14, %v1381_v5 }
  0xfe   :  { %v723_v19 = vadd.f32 %v1534_v16, %v667_v18  ;;  %v1501_v20 = vpop.f32.mrb[4].mxu0 }
  0xff   :  { %v1502_v21 = vpop.f32.mrb[5].mxu0  ;;  %v1535_v26 = vpop.f32.mrb[4].mxu1 }
 0x100   :  { %v1503_v22 = vadd.f32 %v1502_v21, %v1501_v20  ;;  %v1504_v23 = vpop.f32.mrb[6].mxu0  ;;  %v1536_v28 = vpop.f32.mrb[5].mxu1 }
 0x101   :  { %v1505_v24 = vpop.f32.mrb[7].mxu0  ;;  %v1537_v30 = vadd.f32 %v1536_v28, %v1535_v26  ;;  %v1538_v31 = vpop.f32.mrb[6].mxu1 }
 0x102   :  { %v672_v25 = vadd.f32 %v1503_v22, %v1381_v5  ;;  %v1506_v27 = vadd.f32 %v1505_v24, %v1504_v23  ;;  %v1539_v32 = vpop.f32.mrb[7].mxu1 }
 0x103   :  { %v1540_v34 = vadd.f32 %v1539_v32, %v1538_v31 }
 0x104   :  { %v675_v29 = vadd.f32 %v1506_v27, %v1381_v5  ;;  %v728_v33 = vadd.f32 %v1537_v30, %v672_v25 }
 0x106   :  { %v731_v35 = vadd.f32 %v1540_v34, %v675_v29  ;;  %v1507_v36 = vpop.f32.mrb[8].mxu0 }
 0x107   :  { %v1508_v37 = vpop.f32.mrb[9].mxu0  ;;  %v1541_v42 = vpop.f32.mrb[8].mxu1 }
 0x108   :  { %v1509_v38 = vadd.f32 %v1508_v37, %v1507_v36  ;;  %v1510_v39 = vpop.f32.mrb[10].mxu0  ;;  %v1542_v43 = vpop.f32.mrb[9].mxu1  ;;  %v1804_v36 = vld [vmem:[%s2360_s5] sm:$0xff]  }
 0x109   :  { %v1511_v40 = vpop.f32.mrb[11].mxu0  ;;  %v1543_v44 = vadd.f32 %v1542_v43, %v1541_v42  ;;  %v1544_v45 = vpop.f32.mrb[10].mxu1  ;;  %v1806_v39 = vld [vmem:[%s2360_s5 + $0x10] sm:$0xff]   ;;  %v1809_v42 = vld [vmem:[%s2362_s7 + $0x8] sm:$0xff]   ;;  %v1446_v43 = vld [vmem:[%s2359_s4] ss:$0 sm:$0xff] }
 0x10a   :  { %v680_v41 = vadd.f32 %v1509_v38, %v1381_v5  ;;  %v1545_v46 = vpop.f32.mrb[11].mxu1  ;;  %v1805_v38 = vld [vmem:[%s2360_s5 + $0x8] sm:$0xff]   ;;  %v1807_v40 = vld [vmem:[%s2360_s5 + $0x18] sm:$0xff]  }
 0x10c   :  { %v736_v47 = vadd.f32 %v1543_v44, %v680_v41  ;;  %v1808_v41 = vld [vmem:[%s2362_s7] sm:$0xff]  }
 0x116   :  { %v1563_v48 = vpop.f32.mrb[12].mxu0 }
 0x117   :  { %v1597_v49 = vpop.f32.mrb[12].mxu1  ;;  %v1564_v50 = vpop.f32.mrb[13].mxu0 }
 0x118   :  { %v1565_v51 = vadd.f32 %v1564_v50, %v1563_v48  ;;  %v1598_v52 = vpop.f32.mrb[13].mxu1  ;;  %v1566_v53 = vpop.f32.mrb[14].mxu0 }
 0x119   :  { %v1599_v54 = vadd.f32 %v1598_v52, %v1597_v49  ;;  %v1600_v55 = vpop.f32.mrb[14].mxu1  ;;  %v1567_v56 = vpop.f32.mrb[15].mxu0 }
 0x11a   :  { %v776_v57 = vadd.f32 %v1565_v51, %v720_v17  ;;  %v1568_v58 = vadd.f32 %v1567_v56, %v1566_v53  ;;  %v1601_v59 = vpop.f32.mrb[15].mxu1 }
 0x11b   :  { %v1602_v60 = vadd.f32 %v1601_v59, %v1600_v55 }
 0x11c   :  { %v832_v61 = vadd.f32 %v1599_v54, %v776_v57  ;;  %v779_v62 = vadd.f32 %v1568_v58, %v723_v19 }
 0x11e   :  { %v835_v63 = vadd.f32 %v1602_v60, %v779_v62  ;;  %v1569_v1 = vpop.f32.mrb[16].mxu0  ;;  %v853_v4 = vmax.f32 %v832_v61, 0.0 }
 0x11f   :  { %v1603_v2 = vpop.f32.mrb[16].mxu1  ;;  %v1570_v3 = vpop.f32.mrb[17].mxu0 }
 0x120   :  { %v854_v5 = vmax.f32 %v835_v63, 0.0  ;;  %v1571_v6 = vadd.f32 %v1570_v3, %v1569_v1  ;;  %v1604_v7 = vpop.f32.mrb[17].mxu1  ;;  %v1572_v8 = vpop.f32.mrb[18].mxu0 }
 0x121   :  { %v1605_v9 = vadd.f32 %v1604_v7, %v1603_v2  ;;  %v1606_v10 = vpop.f32.mrb[18].mxu1  ;;  %v1573_v11 = vpop.f32.mrb[19].mxu0  ;;  %v1811_v7 = vld [vmem:[%s2362_s7 + $0x18] sm:$0xff]  }
 0x122   :  { %v858_v12 = vpack.c.bf16 %v854_v5, %v853_v4  ;;  %v784_v13 = vadd.f32 %v1571_v6, %v728_v33  ;;  %v1574_v14 = vadd.f32 %v1573_v11, %v1572_v8  ;;  %v1607_v15 = vpop.f32.mrb[19].mxu1  ;;  %v1810_v6 = vld [vmem:[%s2362_s7 + $0x10] sm:$0xff]   ;;  %v1812_v8 = vld [vmem:[%s2364_s9] sm:$0xff]  }
 0x123   :  { %v1608_v16 = vadd.f32 %v1607_v15, %v1606_v10  ;;  %v1452_v10 = vld [vmem:[%s2361_s6] ss:$0 sm:$0xff] }
 0x124   :  { %v840_v17 = vadd.f32 %v1605_v9, %v784_v13  ;;  %v787_v18 = vadd.f32 %v1574_v14, %v731_v35  ;;  %1648 = vmatmul.mubr.msk.bf16.vlgmr.msra.gmra.mrb[24].mxu0 %vm884_vm1, %v858_v12  ;;  %v1813_v9 = vld [vmem:[%s2364_s9 + $0x8] sm:$0xff]  }
 0x125   :  { %1651 = vmatprep.mubr.msk.bf16.mxu0 %vm1840_vm0, %v1839_v0  ;;  %1680 = vmatpush3.bf16.msra.mxu0 %v1808_v41 }
 0x126   :  { %v843_v19 = vadd.f32 %v1608_v16, %v787_v18  ;;  %v1575_v20 = vpop.f32.mrb[20].mxu0  ;;  %v855_v23 = vmax.f32 %v840_v17, 0.0  ;;  %1681 = vmatprep.subr.bf16.mxu0 %v1839_v0 }
 0x127   :  { %v1576_v21 = vpop.f32.mrb[21].mxu0  ;;  %v1609_v22 = vpop.f32.mrb[20].mxu1 }
 0x128   :  { %v856_v24 = vmax.f32 %v843_v19, 0.0  ;;  %v1577_v25 = vadd.f32 %v1576_v21, %v1575_v20  ;;  %v1610_v26 = vpop.f32.mrb[21].mxu1  ;;  %v1578_v27 = vpop.f32.mrb[22].mxu0 }
 0x129   :  { %v1611_v28 = vadd.f32 %v1610_v26, %v1609_v22  ;;  %v1579_v29 = vpop.f32.mrb[23].mxu0  ;;  %v1612_v30 = vpop.f32.mrb[22].mxu1  ;;  %1682 = vmatpush3.bf16.msra.mxu0 %v1809_v42 }
 0x12a   :  { %v859_v31 = vpack.c.bf16 %v856_v24, %v855_v23  ;;  %v792_v32 = vadd.f32 %v1577_v25, %v736_v47  ;;  %v1613_v33 = vpop.f32.mrb[23].mxu1  ;;  %1683 = vmatprep.subr.bf16.mxu0 %v1839_v0 }
 0x12c   :  { %v848_v34 = vadd.f32 %v1611_v28, %v792_v32  ;;  %1652 = vmatmul.mubr.msk.bf16.gmra.mrb[28].mxu0 %vm884_vm1, %v859_v31 }
 0x12d   :  { %1687 = vmatprep.mubr.msk.bf16.mxu0 %vm1840_vm0, %v1839_v0  ;;  %1684 = vmatpush3.bf16.msra.mxu0 %v1810_v6 }
 0x12e   :  { %v857_v35 = vmax.f32 %v848_v34, 0.0  ;;  %1685 = vmatprep.subr.bf16.mxu0 %v1839_v0 }
 0x130   :  { %v860_v37 = vpack.c.bf16 %v857_v35, %v857_v35 }
 0x131   :  { %1686 = vmatpush3.bf16.msra.mxu0 %v1811_v7 }
 0x132   :  { %1656 = vmatmul.mubr.msk.bf16.vlgmr.msra.gmra.mrb[24].mxu1 %vm884_vm1, %v860_v37  ;;  %1715 = vmatprep.subr.bf16.mxu0 %v1839_v0  ;;  %v1460_v37 = vld [vmem:[%s2363_s8] ss:$0 sm:$0xff] }
 0x133   :  { %1660 = vmatpush3.bf16.msra.mxu1 %v1804_v36  ;;  %1667 = vmatprep.mubr.msk.bf16.mxu1 %vm1840_vm0, %v1839_v0  ;;  %v1814_v36 = vld [vmem:[%s2366_s11] sm:$0xff]  }
 0x134   :  { %1661 = vmatprep.subr.bf16.mxu1 %v1839_v0 }
 0x137   :  { %1662 = vmatpush3.bf16.msra.mxu1 %v1805_v38 }
 0x138   :  { %1663 = vmatprep.subr.bf16.mxu1 %v1839_v0 }
 0x13b   :  { %1664 = vmatpush3.bf16.msra.mxu1 %v1806_v39 }
 0x13c   :  { %1665 = vmatprep.subr.bf16.mxu1 %v1839_v0 }
 0x13f   :  { %1666 = vmatpush3.bf16.msra.mxu1 %v1807_v40 }
 0x140   :  { %1699 = vmatprep.subr.bf16.mxu1 %v1839_v0 }
 0x1f7   :  { %v928_v44 = vpop.f32.mrb[24].mxu0 }
 0x1f8   :  { %v929_v45 = vadd.f32 %v1446_v43, %v928_v44  ;;  %v1649_v46 = vpop.f32.mrb[25].mxu0 }
 0x1f9   :  { %v931_v47 = vpop.f32.mrb[26].mxu0 }
 0x1fa   :  { %v932_v48 = vadd.f32 %v1446_v43, %v931_v47  ;;  %v1650_v49 = vpop.f32.mrb[27].mxu0  ;;  %v950_v50 = vmax.f32 %v929_v45, 0.0 }
 0x1fc   :  { %v951_v51 = vmax.f32 %v932_v48, 0.0 }
 0x1fe   :  { %v955_v52 = vpack.c.bf16 %v951_v51, %v950_v50 }
 0x1ff   :  { %v936_v53 = vpop.f32.mrb[28].mxu0 }
 0x200   :  { %v937_v54 = vadd.f32 %v1446_v43, %v936_v53  ;;  %v1653_v55 = vpop.f32.mrb[29].mxu0  ;;  %1668 = vmatmul.mubr.msk.bf16.vlgmr.msra.gmra.mrb[28].mxu1 %vm997_vm2, %v955_v52 }
 0x201   :  { %v939_v56 = vpop.f32.mrb[30].mxu0  ;;  %1671 = vmatprep.mubr.msk.bf16.mxu1 %vm1840_vm0, %v1839_v0  ;;  %1700 = vmatpush3.bf16.msra.mxu1 %v1812_v8 }
 0x202   :  { %v940_v57 = vadd.f32 %v1446_v43, %v939_v56  ;;  %v1654_v58 = vpop.f32.mrb[31].mxu0  ;;  %v952_v59 = vmax.f32 %v937_v54, 0.0  ;;  %1701 = vmatprep.subr.bf16.mxu1 %v1839_v0 }
 0x204   :  { %v953_v60 = vmax.f32 %v940_v57, 0.0 }
 0x205   :  { %v944_v61 = vpop.f32.mrb[24].mxu1  ;;  %1702 = vmatpush3.bf16.msra.mxu1 %v1813_v9 }
 0x206   :  { %v956_v62 = vpack.c.bf16 %v953_v60, %v952_v59  ;;  %v945_v63 = vadd.f32 %v1446_v43, %v944_v61  ;;  %v1657_v1 = vpop.f32.mrb[25].mxu1 }
 0x207   :  { %v947_v2 = vpop.f32.mrb[26].mxu1 }
 0x208   :  { %v1658_v3 = vpop.f32.mrb[27].mxu1  ;;  %1672 = vmatmul.mubr.msk.bf16.gmra.mrb[32].mxu1 %vm997_vm2, %v956_v62  ;;  %v954_v4 = vmax.f32 %v945_v63, 0.0  ;;  %v1468_v63 = vld [vmem:[%s2365_s10] ss:$0 sm:$0xff] }
 0x209   :  { %1675 = vmatprep.mubr.msk.bf16.mxu1 %vm1840_vm0, %v1839_v0 }
 0x20a   :  { %v957_v5 = vpack.c.bf16 %v954_v4, %v954_v4 }
 0x210   :  { %1676 = vmatmul.mubr.msk.bf16.gmra.mrb[36].mxu1 %vm997_vm2, %v957_v5 }
 0x211   :  { %1703 = vmatprep.mubr.msk.bf16.mxu1 %vm1840_vm0, %v1839_v0 }
 0x2d3   :  { %v1041_v11 = vpop.f32.mrb[28].mxu1 }
 0x2d4   :  { %v1042_v12 = vadd.f32 %v1452_v10, %v1041_v11  ;;  %v1669_v13 = vpop.f32.mrb[29].mxu1 }
 0x2d5   :  { %v1044_v14 = vpop.f32.mrb[30].mxu1 }
 0x2d6   :  { %v1045_v15 = vadd.f32 %v1452_v10, %v1044_v14  ;;  %v1670_v16 = vpop.f32.mrb[31].mxu1  ;;  %v1063_v17 = vmax.f32 %v1042_v12, 0.0 }
 0x2d8   :  { %v1064_v18 = vmax.f32 %v1045_v15, 0.0 }
 0x2da   :  { %v1068_v19 = vpack.c.bf16 %v1064_v18, %v1063_v17 }
 0x2db   :  { %v1049_v20 = vpop.f32.mrb[32].mxu1 }
 0x2dc   :  { %v1050_v21 = vadd.f32 %v1452_v10, %v1049_v20  ;;  %v1673_v22 = vpop.f32.mrb[33].mxu1  ;;  %1688 = vmatmul.mubr.msk.bf16.vlgmr.msra.gmra.mrb[32].mxu0 %vm997_vm2, %v1068_v19 }
 0x2dd   :  { %v1052_v23 = vpop.f32.mrb[34].mxu1  ;;  %1691 = vmatprep.mubr.msk.bf16.mxu0 %vm1840_vm0, %v1839_v0  ;;  %1716 = vmatpush3.bf16.msra.mxu0 %v1814_v36 }
 0x2de   :  { %v1053_v24 = vadd.f32 %v1452_v10, %v1052_v23  ;;  %v1674_v25 = vpop.f32.mrb[35].mxu1  ;;  %v1065_v26 = vmax.f32 %v1050_v21, 0.0 }
 0x2e0   :  { %v1066_v27 = vmax.f32 %v1053_v24, 0.0 }
 0x2e2   :  { %v1069_v28 = vpack.c.bf16 %v1066_v27, %v1065_v26  ;;  %v1474_v26 = vld [vmem:[%s2367_s12] ss:$0 sm:$0xff]  ;;  %s1815_s12 = scalar_lea.vmem %s1371_s16, 640 }
 0x2e3   :  { %v1057_v29 = vpop.f32.mrb[36].mxu1  ;;  %p1816_p0 = scmp.ne.s32.totalorder %s1371_s16, %s1815_s12  ;;  %p1821_p2 = scmp.lt.s32.totalorder %s1815_s12, %s1815_s12 }
 0x2e4   :  { %v1058_v30 = vadd.f32 %v1452_v10, %v1057_v29  ;;  %v1677_v31 = vpop.f32.mrb[37].mxu1  ;;  %1692 = vmatmul.mubr.msk.bf16.gmra.mrb[36].mxu0 %vm997_vm2, %v1069_v28 }
 0x2e5   :  { %v1060_v32 = vpop.f32.mrb[38].mxu1  ;;  %1695 = vmatprep.mubr.msk.bf16.mxu0 %vm1840_vm0, %v1839_v0  ;;  %p1822_p3 = por %p1821_p2, %p1820_p1 }
 0x2e6   :  { %v1067_v33 = vmax.f32 %v1058_v30, 0.0  ;;  %v1678_v34 = vpop.f32.mrb[39].mxu1 }
 0x2e7   :  { %p1823_p4 = pnand %p1822_p3, %p1816_p0 }
 0x2e8   :  { %v1070_v35 = vpack.c.bf16 %v1067_v33, %v1067_v33 }
 0x2ec   :  { %1696 = vmatmul.mubr.msk.bf16.gmra.mrb[40].mxu0 %vm997_vm2, %v1070_v35 }
 0x2ed   :  { %1717 = vmatprep.mubr.msk.bf16.mxu0 %vm1840_vm0, %v1839_v0 }
 0x3af   :  { %v1153_v38 = vpop.f32.mrb[32].mxu0 }
 0x3b0   :  { %v1154_v39 = vadd.f32 %v1460_v37, %v1153_v38  ;;  %v1689_v40 = vpop.f32.mrb[33].mxu0 }
 0x3b1   :  { %v1156_v41 = vpop.f32.mrb[34].mxu0 }
 0x3b2   :  { %v1157_v42 = vadd.f32 %v1460_v37, %v1156_v41  ;;  %v1690_v43 = vpop.f32.mrb[35].mxu0  ;;  %v1175_v44 = vmax.f32 %v1154_v39, 0.0 }
 0x3b4   :  { %v1176_v45 = vmax.f32 %v1157_v42, 0.0 }
 0x3b6   :  { %v1180_v46 = vpack.c.bf16 %v1176_v45, %v1175_v44 }
 0x3b7   :  { %v1161_v47 = vpop.f32.mrb[36].mxu0 }
 0x3b8   :  { %v1162_v48 = vadd.f32 %v1460_v37, %v1161_v47  ;;  %v1693_v49 = vpop.f32.mrb[37].mxu0  ;;  %1704 = vmatmul.mubr.msk.bf16.vlgmr.msra.gmra.mrb[40].mxu1 %vm884_vm1, %v1180_v46 }
 0x3b9   :  { %v1164_v50 = vpop.f32.mrb[38].mxu0  ;;  %1707 = vmatprep.mubr.msk.bf16.mxu1 %vm1840_vm0, %v1839_v0 }
 0x3ba   :  { %v1165_v51 = vadd.f32 %v1460_v37, %v1164_v50  ;;  %v1694_v52 = vpop.f32.mrb[39].mxu0  ;;  %v1177_v53 = vmax.f32 %v1162_v48, 0.0 }
 0x3bc   :  { %v1178_v54 = vmax.f32 %v1165_v51, 0.0 }
 0x3be   :  { %v1181_v55 = vpack.c.bf16 %v1178_v54, %v1177_v53 }
 0x3bf   :  { %v1169_v56 = vpop.f32.mrb[40].mxu0 }
 0x3c0   :  { %v1170_v57 = vadd.f32 %v1460_v37, %v1169_v56  ;;  %v1697_v58 = vpop.f32.mrb[41].mxu0  ;;  %1708 = vmatmul.mubr.msk.bf16.gmra.mrb[44].mxu1 %vm884_vm1, %v1181_v55 }
 0x3c1   :  { %v1172_v59 = vpop.f32.mrb[42].mxu0  ;;  %1711 = vmatprep.mubr.msk.bf16.mxu1 %vm1840_vm0, %v1839_v0 }
 0x3c2   :  { %v1179_v60 = vmax.f32 %v1170_v57, 0.0  ;;  %v1698_v61 = vpop.f32.mrb[43].mxu0 }
 0x3c4   :  { %v1182_v62 = vpack.c.bf16 %v1179_v60, %v1179_v60 }
 0x3c8   :  { %1712 = vmatmul.mubr.msk.bf16.gmra.mrb[48].mxu1 %vm884_vm1, %v1182_v62 }
 0x48b   :  { %v1249_v1 = vpop.f32.mrb[40].mxu1 }
 0x48c   :  { %v1250_v2 = vadd.f32 %v1468_v63, %v1249_v1  ;;  %v1705_v3 = vpop.f32.mrb[41].mxu1 }
 0x48d   :  { %v1252_v4 = vpop.f32.mrb[42].mxu1 }
 0x48e   :  { %v1253_v5 = vadd.f32 %v1468_v63, %v1252_v4  ;;  %v1706_v6 = vpop.f32.mrb[43].mxu1  ;;  %v1271_v7 = vmax.f32 %v1250_v2, 0.0 }
 0x490   :  { %v1272_v8 = vmax.f32 %v1253_v5, 0.0 }
 0x492   :  { %v1276_v9 = vpack.c.bf16 %v1272_v8, %v1271_v7 }
 0x493   :  { %v1257_v10 = vpop.f32.mrb[44].mxu1 }
 0x494   :  { %v1258_v11 = vadd.f32 %v1468_v63, %v1257_v10  ;;  %v1709_v12 = vpop.f32.mrb[45].mxu1  ;;  %1718 = vmatmul.mubr.msk.bf16.vlgmr.msra.gmra.mrb[44].mxu0 %vm1294_vm3, %v1276_v9 }
 0x495   :  { %v1260_v13 = vpop.f32.mrb[46].mxu1  ;;  %1721 = vmatprep.mubr.msk.bf16.mxu0 %vm1840_vm0, %v1839_v0 }
 0x496   :  { %v1261_v14 = vadd.f32 %v1468_v63, %v1260_v13  ;;  %v1710_v15 = vpop.f32.mrb[47].mxu1  ;;  %v1273_v16 = vmax.f32 %v1258_v11, 0.0 }
 0x498   :  { %v1274_v17 = vmax.f32 %v1261_v14, 0.0 }
 0x49a   :  { %v1277_v18 = vpack.c.bf16 %v1274_v17, %v1273_v16 }
 0x49b   :  { %v1265_v19 = vpop.f32.mrb[48].mxu1 }
 0x49c   :  { %v1266_v20 = vadd.f32 %v1468_v63, %v1265_v19  ;;  %v1713_v21 = vpop.f32.mrb[49].mxu1  ;;  %1722 = vmatmul.mubr.msk.bf16.gmra.mrb[48].mxu0 %vm1294_vm3, %v1277_v18 }
 0x49d   :  { %v1268_v22 = vpop.f32.mrb[50].mxu1  ;;  %1725 = vmatprep.mubr.msk.bf16.mxu0 %vm1840_vm0, %v1839_v0 }
 0x49e   :  { %v1275_v23 = vmax.f32 %v1266_v20, 0.0  ;;  %v1714_v24 = vpop.f32.mrb[51].mxu1 }
 0x4a0   :  { %v1278_v25 = vpack.c.bf16 %v1275_v23, %v1275_v23 }
 0x4a4   :  { %1726 = vmatmul.mubr.msk.bf16.gmra.mrb[52].mxu0 %vm1294_vm3, %v1278_v25 }
 0x567   :  { %v1338_v27 = vpop.f32.mrb[44].mxu0 }
 0x568   :  { %v1339_v28 = vadd.f32 %v1474_v26, %v1338_v27  ;;  %v1719_v29 = vpop.f32.mrb[45].mxu0 }
 0x569   :  { %v1341_v30 = vpop.f32.mrb[46].mxu0 }
 0x56a   :  { %1360 = vst [vmem:[#allocation2] sm:$0xff] %v1339_v28  ;;  %v1342_v31 = vadd.f32 %v1474_v26, %v1341_v30  ;;  %v1720_v32 = vpop.f32.mrb[47].mxu0 }
 0x56c   :  { %1361 = vst [vmem:[#allocation2 + $0x8] sm:$0xff] %v1342_v31 }
 0x56f   :  { %v1346_v33 = vpop.f32.mrb[48].mxu0 }
 0x570   :  { %v1347_v34 = vadd.f32 %v1474_v26, %v1346_v33  ;;  %v1723_v0 = vpop.f32.mrb[49].mxu0 }
 0x571   :  { %v1349_v35 = vpop.f32.mrb[50].mxu0 }
 0x572   :  { %1362 = vst [vmem:[#allocation2 + $0x10] sm:$0xff] %v1347_v34  ;;  %v1350_v36 = vadd.f32 %v1474_v26, %v1349_v35  ;;  %v1724_v37 = vpop.f32.mrb[51].mxu0 }
 0x574   :  { %1363 = vst [vmem:[#allocation2 + $0x18] sm:$0xff] %v1350_v36 }
 0x577   :  { %v1354_v38 = vpop.f32.mrb[52].mxu0 }
 0x578   :  { %v1355_v39 = vadd.f32 %v1474_v26, %v1354_v38  ;;  %v1727_v40 = vpop.f32.mrb[53].mxu0 }
 0x579   :  { %v1357_v41 = vpop.f32.mrb[54].mxu0 }
 0x57a   :  { %1364 = vst [vmem:[#allocation2 + $0x20] sm:$0xff] %v1355_v39  ;;  %v1728_v42 = vpop.f32.mrb[55].mxu0 }
 0x57b   :  { %1826 = shalt.err (!%p1823_p4)
}
 0x57c   :  { %s1827_s19 = scalar_lea.hbm %s2368_s13, 640 }
 0x57d   :  { %p1828_p5 = scmp.ne.s32.totalorder %s2368_s13, %s1827_s19  ;;  %p1831_p6 = scmp.lt.u32.totalorder %s1827_s19, %s2368_s13 }
 0x57f   :  { %p1833_p7 = pnand %p1831_p6, %p1828_p5 }
 0x581   :  { %1836 = shalt.err (!%p1833_p7)
}
 0x582   :  { %s1842_s24 = smov 128   ;;  %s1843_s25 = smov 8  }
 0x583   :  { %1376 = dma.vmem_to_hbm [thread:$0]  %s1371_s16, 640, %s2368_s13, [#allocation3], %s1842_s24, %s1842_s24, %s1843_s25  }
 0x584   :  { %1837 = dma.done.wait [#allocation3], 640  }
 0x585   :  { %1838 = vsyncadd [#allocation3], 4294966656 }
 0x586   :  { %1380 = vsyncpa [#allocation3], 1 }

// kernel: tpu_custom_call.1
= control target key start
LH: loop header
LB: loop body
LE: loop exit
PB: predicated region body
PF: predicated region fallthrough
CT: control target
= control target key end

     0   :  { %s2355_s0 = inlined_call_operand.vmem [shape: f32[40,1024], index: 0, kind: input, shape index: {}]   ;;  %s2356_s1 = inlined_call_operand.vmem [shape: bf16[1024,32], index: 1, kind: input, shape index: {}]   ;;  %s2357_s2 = inlined_call_operand.vmem [shape: f32[1,32], index: 2, kind: input, shape index: {}]   ;;  %s2358_s3 = inlined_call_operand.vmem [shape: bf16[32,64], index: 3, kind: input, shape index: {}]   ;;  %s2359_s4 = inlined_call_operand.vmem [shape: f32[1,64], index: 4, kind: input, shape index: {}]   ;;  %s2360_s5 = inlined_call_operand.vmem [shape: bf16[64,64], index: 5, kind: input, shape index: {}]   ;;  %s2361_s6 = inlined_call_operand.vmem [shape: f32[1,64], index: 6, kind: input, shape index: {}]   ;;  %s2362_s7 = inlined_call_operand.vmem [shape: bf16[64,32], index: 7, kind: input, shape index: {}]   ;;  %s2363_s8 = inlined_call_operand.vmem [shape: f32[1,32], index: 8, kind: input, shape index: {}]   ;;  %s2364_s9 = inlined_call_operand.vmem [shape: bf16[32,16], index: 9, kind: input, shape index: {}]   ;;  %s2365_s10 = inlined_call_operand.vmem [shape: f32[1,16], index: 10, kind: input, shape index: {}]   ;;  %s2366_s11 = inlined_call_operand.vmem [shape: bf16[16,128], index: 11, kind: input, shape index: {}]   ;;  %s2367_s12 = inlined_call_operand.vmem [shape: f32[1,128], index: 12, kind: input, shape index: {}]   ;;  %s2368_s13 = inlined_call_operand.hbm [shape: f32[40,128], index: 13, kind: output, shape index: {}]  }
   0x1   :  { %v1738_v0 = vld [vmem:[%s2356_s1 + $0x40] sm:$0xff]   ;;  %v1742_v4 = vld [vmem:[%s2356_s1 + $0x48] sm:$0xff]   ;;  %v1746_v8 = vld [vmem:[%s2356_s1 + $0x50] sm:$0xff]  }
   0x2   :  { %v1739_v1 = vld [vmem:[%s2356_s1 + $0xc0] sm:$0xff]   ;;  %1479 = vmatprep.subr.bf16.mxu0 %v1738_v0  ;;  %v1743_v5 = vld [vmem:[%s2356_s1 + $0xc8] sm:$0xff]   ;;  %v1747_v9 = vld [vmem:[%s2356_s1 + $0xd0] sm:$0xff]  }
   0x3   :  { %v1740_v2 = vld [vmem:[%s2356_s1] sm:$0xff]   ;;  %1513 = vmatprep.subr.bf16.mxu1 %v1739_v1  ;;  %v1744_v6 = vld [vmem:[%s2356_s1 + $0x8] sm:$0xff]   ;;  %v1748_v10 = vld [vmem:[%s2356_s1 + $0x10] sm:$0xff]  }
   0x4   :  { %v1741_v3 = vld [vmem:[%s2356_s1 + $0x80] sm:$0xff]   ;;  %1480 = vmatpush3.bf16.msra.mxu0 %v1740_v2  ;;  %v1745_v7 = vld [vmem:[%s2356_s1 + $0x88] sm:$0xff]   ;;  %v1749_v11 = vld [vmem:[%s2356_s1 + $0x90] sm:$0xff]  }
   0x5   :  { %1514 = vmatpush3.bf16.msra.mxu1 %v1741_v3  ;;  %1481 = vmatprep.subr.bf16.mxu0 %v1742_v4  ;;  %v1750_v12 = vld [vmem:[%s2356_s1 + $0x58] sm:$0xff]   ;;  %v1754_v16 = vld [vmem:[%s2356_s1 + $0x60] sm:$0xff]   ;;  %v1758_v20 = vld [vmem:[%s2356_s1 + $0x68] sm:$0xff]  }
   0x6   :  { %1515 = vmatprep.subr.bf16.mxu1 %v1743_v5  ;;  %v1751_v13 = vld [vmem:[%s2356_s1 + $0xd8] sm:$0xff]   ;;  %v1755_v17 = vld [vmem:[%s2356_s1 + $0xe0] sm:$0xff]   ;;  %v1759_v21 = vld [vmem:[%s2356_s1 + $0xe8] sm:$0xff]  }
   0x7   :  { %v1752_v14 = vld [vmem:[%s2356_s1 + $0x18] sm:$0xff]   ;;  %v1756_v18 = vld [vmem:[%s2356_s1 + $0x20] sm:$0xff]   ;;  %v1760_v22 = vld [vmem:[%s2356_s1 + $0x28] sm:$0xff]  }
   0x8   :  { %1482 = vmatpush3.bf16.msra.mxu0 %v1744_v6  ;;  %v1753_v15 = vld [vmem:[%s2356_s1 + $0x98] sm:$0xff]   ;;  %v1757_v19 = vld [vmem:[%s2356_s1 + $0xa0] sm:$0xff]   ;;  %v1761_v23 = vld [vmem:[%s2356_s1 + $0xa8] sm:$0xff]  }
   0x9   :  { %1516 = vmatpush3.bf16.msra.mxu1 %v1745_v7  ;;  %1483 = vmatprep.subr.bf16.mxu0 %v1746_v8  ;;  %v1762_v24 = vld [vmem:[%s2356_s1 + $0x70] sm:$0xff]   ;;  %v1766_v28 = vld [vmem:[%s2356_s1 + $0x78] sm:$0xff]   ;;  %v47_v32 = vld [vmem:[%s2355_s0 + $0x8] sm:$0xff] }
   0xa   :  { %1517 = vmatprep.subr.bf16.mxu1 %v1747_v9  ;;  %v1763_v25 = vld [vmem:[%s2356_s1 + $0xf0] sm:$0xff]   ;;  %v1767_v29 = vld [vmem:[%s2356_s1 + $0xf8] sm:$0xff]   ;;  %v55_v33 = vld [vmem:[%s2355_s0 + $0x48] sm:$0xff] }
   0xb   :  { %v1764_v26 = vld [vmem:[%s2356_s1 + $0x30] sm:$0xff]   ;;  %v1768_v30 = vld [vmem:[%s2356_s1 + $0x38] sm:$0xff]   ;;  %v87_v35 = vpack.c.bf16 %v55_v33, %v47_v32  ;;  %v46_v37 = vld [vmem:[%s2355_s0] sm:$0xff] }
   0xc   :  { %1484 = vmatpush3.bf16.msra.mxu0 %v1748_v10  ;;  %v1765_v27 = vld [vmem:[%s2356_s1 + $0xb0] sm:$0xff]   ;;  %v1769_v31 = vld [vmem:[%s2356_s1 + $0xb8] sm:$0xff]   ;;  %v54_v38 = vld [vmem:[%s2355_s0 + $0x40] sm:$0xff] }
   0xd   :  { %1518 = vmatpush3.bf16.msra.mxu1 %v1749_v11  ;;  %1485 = vmatprep.subr.bf16.mxu0 %v1750_v12  ;;  %v49_v34 = vld [vmem:[%s2355_s0 + $0x18] sm:$0xff]  ;;  %v86_v40 = vpack.c.bf16 %v54_v38, %v46_v37  ;;  %v48_v41 = vld [vmem:[%s2355_s0 + $0x10] sm:$0xff]  ;;  %v1770_v44 = vld [vmem:[%s2356_s1 + $0x140] sm:$0xff]  }
   0xe   :  { %1519 = vmatprep.subr.bf16.mxu1 %v1751_v13  ;;  %v57_v36 = vld [vmem:[%s2355_s0 + $0x58] sm:$0xff]  ;;  %v56_v42 = vld [vmem:[%s2355_s0 + $0x50] sm:$0xff]  ;;  %661 = vmatprep.mubr.bf16.mxu0 %v87_v35  ;;  %v1771_v45 = vld [vmem:[%s2356_s1 + $0x1c0] sm:$0xff]  }
   0xf   :  { %v89_v39 = vpack.c.bf16 %v57_v36, %v49_v34  ;;  %v88_v43 = vpack.c.bf16 %v56_v42, %v48_v41  ;;  %v1772_v46 = vld [vmem:[%s2356_s1 + $0x100] sm:$0xff]   ;;  %v1774_v48 = vld [vmem:[%s2356_s1 + $0x148] sm:$0xff]   ;;  %v1778_v52 = vld [vmem:[%s2356_s1 + $0x150] sm:$0xff]  }
  0x10   :  { %1486 = vmatpush3.bf16.msra.mxu0 %v1752_v14  ;;  %v1773_v47 = vld [vmem:[%s2356_s1 + $0x180] sm:$0xff]   ;;  %v1775_v49 = vld [vmem:[%s2356_s1 + $0x1c8] sm:$0xff]   ;;  %v1779_v53 = vld [vmem:[%s2356_s1 + $0x1d0] sm:$0xff]  }
  0x11   :  { %1520 = vmatpush3.bf16.msra.mxu1 %v1753_v15  ;;  %1487 = vmatprep.subr.bf16.mxu0 %v1754_v16  ;;  %v1776_v50 = vld [vmem:[%s2356_s1 + $0x108] sm:$0xff]   ;;  %v1780_v54 = vld [vmem:[%s2356_s1 + $0x110] sm:$0xff]   ;;  %v1782_v59 = vld [vmem:[%s2356_s1 + $0x158] sm:$0xff]  }
  0x12   :  { %1521 = vmatprep.subr.bf16.mxu1 %v1755_v17  ;;  %717 = vmatprep.mubr.bf16.mxu1 %v89_v39  ;;  %v1777_v51 = vld [vmem:[%s2356_s1 + $0x188] sm:$0xff]   ;;  %v1781_v55 = vld [vmem:[%s2356_s1 + $0x190] sm:$0xff]   ;;  %v1783_v60 = vld [vmem:[%s2356_s1 + $0x1d8] sm:$0xff]  }
  0x13   :  { %v63_v56 = vld [vmem:[%s2355_s0 + $0x88] sm:$0xff]  ;;  %v62_v61 = vld [vmem:[%s2355_s0 + $0x80] sm:$0xff]  ;;  %v1784_v0 = vld [vmem:[%s2356_s1 + $0x118] sm:$0xff]  }
  0x14   :  { %1488 = vmatpush3.bf16.msra.mxu0 %v1756_v18  ;;  %v71_v57 = vld [vmem:[%s2355_s0 + $0xc8] sm:$0xff]  ;;  %v70_v62 = vld [vmem:[%s2355_s0 + $0xc0] sm:$0xff]  ;;  %v1785_v1 = vld [vmem:[%s2356_s1 + $0x198] sm:$0xff]  }
  0x15   :  { %1522 = vmatpush3.bf16.msra.mxu1 %v1757_v19  ;;  %1489 = vmatprep.subr.bf16.mxu0 %v1758_v20  ;;  %v95_v58 = vpack.c.bf16 %v71_v57, %v63_v56  ;;  %v94_v63 = vpack.c.bf16 %v70_v62, %v62_v61  ;;  %v65_v2 = vld [vmem:[%s2355_s0 + $0x98] sm:$0xff]  ;;  %v64_v4 = vld [vmem:[%s2355_s0 + $0x90] sm:$0xff]  ;;  %v1786_v8 = vld [vmem:[%s2356_s1 + $0x160] sm:$0xff]  }
  0x16   :  { %1523 = vmatprep.subr.bf16.mxu1 %v1759_v21  ;;  %v73_v3 = vld [vmem:[%s2355_s0 + $0xd8] sm:$0xff]  ;;  %v72_v6 = vld [vmem:[%s2355_s0 + $0xd0] sm:$0xff]  ;;  %v1787_v9 = vld [vmem:[%s2356_s1 + $0x1e0] sm:$0xff]  }
  0x17   :  { %v97_v5 = vpack.c.bf16 %v73_v3, %v65_v2  ;;  %v96_v7 = vpack.c.bf16 %v72_v6, %v64_v4  ;;  %v1788_v10 = vld [vmem:[%s2356_s1 + $0x120] sm:$0xff]   ;;  %v79_v12 = vld [vmem:[%s2355_s0 + $0x108] sm:$0xff]  ;;  %v81_v20 = vld [vmem:[%s2355_s0 + $0x118] sm:$0xff] }
  0x18   :  { %1490 = vmatpush3.bf16.msra.mxu0 %v1760_v22  ;;  %v1789_v11 = vld [vmem:[%s2356_s1 + $0x1a0] sm:$0xff]   ;;  %v103_v13 = vpack.c.bf16 %v79_v12, %v79_v12  ;;  %v1790_v14 = vld [vmem:[%s2356_s1 + $0x168] sm:$0xff]   ;;  %v80_v21 = vld [vmem:[%s2355_s0 + $0x110] sm:$0xff]  ;;  %v105_v22 = vpack.c.bf16 %v81_v20, %v81_v20 }
  0x19   :  { %1524 = vmatpush3.bf16.msra.mxu1 %v1761_v23  ;;  %1491 = vmatprep.subr.bf16.mxu0 %v1762_v24  ;;  %v1791_v15 = vld [vmem:[%s2356_s1 + $0x1e8] sm:$0xff]   ;;  %v78_v16 = vld [vmem:[%s2355_s0 + $0x100] sm:$0xff]  ;;  %v104_v23 = vpack.c.bf16 %v80_v21, %v80_v21  ;;  %v1794_v24 = vld [vmem:[%s2356_s1 + $0x170] sm:$0xff]  }
  0x1a   :  { %1525 = vmatprep.subr.bf16.mxu1 %v1763_v25  ;;  %v102_v17 = vpack.c.bf16 %v78_v16, %v78_v16  ;;  %v1792_v18 = vld [vmem:[%s2356_s1 + $0x128] sm:$0xff]   ;;  %v1795_v25 = vld [vmem:[%s2356_s1 + $0x1f0] sm:$0xff]   ;;  %v53_v34 = vld [vmem:[%s2355_s0 + $0x38] sm:$0xff] }
  0x1b   :  { %v1793_v19 = vld [vmem:[%s2356_s1 + $0x1a8] sm:$0xff]   ;;  %v61_v35 = vld [vmem:[%s2355_s0 + $0x78] sm:$0xff]  ;;  %v50_v38 = vld [vmem:[%s2355_s0 + $0x20] sm:$0xff] }
  0x1c   :  { %1492 = vmatpush3.bf16.msra.mxu0 %v1764_v26  ;;  %v1796_v26 = vld [vmem:[%s2356_s1 + $0x130] sm:$0xff]   ;;  %v51_v32 = vld [vmem:[%s2355_s0 + $0x28] sm:$0xff]  ;;  %v93_v37 = vpack.c.bf16 %v61_v35, %v53_v34  ;;  %v58_v39 = vld [vmem:[%s2355_s0 + $0x60] sm:$0xff] }
  0x1d   :  { %1526 = vmatpush3.bf16.msra.mxu1 %v1765_v27  ;;  %1493 = vmatprep.subr.bf16.mxu0 %v1766_v28  ;;  %v1797_v27 = vld [vmem:[%s2356_s1 + $0x1b0] sm:$0xff]   ;;  %v1798_v28 = vld [vmem:[%s2356_s1 + $0x178] sm:$0xff]   ;;  %v59_v33 = vld [vmem:[%s2355_s0 + $0x68] sm:$0xff]  ;;  %v90_v41 = vpack.c.bf16 %v58_v39, %v50_v38 }
  0x1e   :  { %1527 = vmatprep.subr.bf16.mxu1 %v1767_v29  ;;  %v1799_v29 = vld [vmem:[%s2356_s1 + $0x1f8] sm:$0xff]   ;;  %v91_v36 = vpack.c.bf16 %v59_v33, %v51_v32  ;;  %v60_v42 = vld [vmem:[%s2355_s0 + $0x70] sm:$0xff] }
  0x1f   :  { %v84_v61 = vld [vmem:[%s2355_s0 + $0x130] sm:$0xff] }
  0x20   :  { %1494 = vmatpush3.bf16.msra.mxu0 %v1768_v30  ;;  %v1800_v30 = vld [vmem:[%s2356_s1 + $0x138] sm:$0xff]  }
  0x21   :  { %1528 = vmatpush3.bf16.msra.mxu1 %v1769_v31  ;;  %1547 = vmatprep.subr.bf16.mxu0 %v1770_v44  ;;  %v1801_v31 = vld [vmem:[%s2356_s1 + $0x1b8] sm:$0xff]   ;;  %v75_v44 = vld [vmem:[%s2355_s0 + $0xe8] sm:$0xff] }
  0x22   :  { %1581 = vmatprep.subr.bf16.mxu1 %v1771_v45 }
  0x23   :  { %662 = vmatmul.mubr.bf16.vlgmr.msra.gmra.mrb[0].mxu0 %v86_v40  ;;  %v52_v40 = vld [vmem:[%s2355_s0 + $0x30] sm:$0xff] }
  0x24   :  { %718 = vmatmul.mubr.bf16.vlgmr.msra.gmra.mrb[0].mxu1 %v88_v43  ;;  %1548 = vmatpush3.bf16.msra.mxu0 %v1772_v46  ;;  %v67_v43 = vld [vmem:[%s2355_s0 + $0xa8] sm:$0xff]  ;;  %v92_v45 = vpack.c.bf16 %v60_v42, %v52_v40 }
  0x25   :  { %1582 = vmatpush3.bf16.msra.mxu1 %v1773_v47  ;;  %1549 = vmatprep.subr.bf16.mxu0 %v1774_v48  ;;  %v99_v46 = vpack.c.bf16 %v75_v44, %v67_v43  ;;  %v69_v47 = vld [vmem:[%s2355_s0 + $0xb8] sm:$0xff] }
  0x26   :  { %1583 = vmatprep.subr.bf16.mxu1 %v1775_v49  ;;  %669 = vmatprep.mubr.bf16.mxu0 %v95_v58  ;;  %v77_v48 = vld [vmem:[%s2355_s0 + $0xf8] sm:$0xff] }
  0x27   :  { %725 = vmatprep.mubr.bf16.mxu1 %v97_v5  ;;  %v101_v49 = vpack.c.bf16 %v77_v48, %v69_v47 }
  0x28   :  { %1550 = vmatpush3.bf16.msra.mxu0 %v1776_v50  ;;  %v66_v50 = vld [vmem:[%s2355_s0 + $0xa0] sm:$0xff] }
  0x29   :  { %1584 = vmatpush3.bf16.msra.mxu1 %v1777_v51  ;;  %1551 = vmatprep.subr.bf16.mxu0 %v1778_v52  ;;  %v74_v51 = vld [vmem:[%s2355_s0 + $0xe0] sm:$0xff]  ;;  %v68_v52 = vld [vmem:[%s2355_s0 + $0xb0] sm:$0xff] }
  0x2a   :  { %1585 = vmatprep.subr.bf16.mxu1 %v1779_v53  ;;  %v76_v53 = vld [vmem:[%s2355_s0 + $0xf0] sm:$0xff]  ;;  %v98_v56 = vpack.c.bf16 %v74_v51, %v66_v50 }
  0x2b   :  { %670 = vmatmul.mubr.bf16.gmra.mrb[4].mxu0 %v94_v63  ;;  %v100_v57 = vpack.c.bf16 %v76_v53, %v68_v52 }
  0x2c   :  { %1552 = vmatpush3.bf16.msra.mxu0 %v1780_v54  ;;  %726 = vmatmul.mubr.bf16.gmra.mrb[4].mxu1 %v96_v7  ;;  %v83_v54 = vld [vmem:[%s2355_s0 + $0x128] sm:$0xff] }
  0x2d   :  { %1586 = vmatpush3.bf16.msra.mxu1 %v1781_v55  ;;  %1553 = vmatprep.subr.bf16.mxu0 %v1782_v59  ;;  %v85_v55 = vld [vmem:[%s2355_s0 + $0x138] sm:$0xff]  ;;  %v107_v58 = vpack.c.bf16 %v83_v54, %v83_v54 }
  0x2e   :  { %1587 = vmatprep.subr.bf16.mxu1 %v1783_v60  ;;  %677 = vmatprep.mubr.bf16.mxu0 %v103_v13  ;;  %v109_v59 = vpack.c.bf16 %v85_v55, %v85_v55  ;;  %v82_v60 = vld [vmem:[%s2355_s0 + $0x120] sm:$0xff] }
  0x2f   :  { %733 = vmatprep.mubr.bf16.mxu1 %v105_v22 }
  0x30   :  { %1554 = vmatpush3.bf16.msra.mxu0 %v1784_v0 }
  0x31   :  { %1588 = vmatpush3.bf16.msra.mxu1 %v1785_v1  ;;  %1555 = vmatprep.subr.bf16.mxu0 %v1786_v8 }
  0x32   :  { %1589 = vmatprep.subr.bf16.mxu1 %v1787_v9 }
  0x33   :  { %678 = vmatmul.mubr.bf16.gmra.mrb[8].mxu0 %v102_v17 }
  0x34   :  { %1556 = vmatpush3.bf16.msra.mxu0 %v1788_v10  ;;  %734 = vmatmul.mubr.bf16.gmra.mrb[8].mxu1 %v104_v23 }
  0x35   :  { %1590 = vmatpush3.bf16.msra.mxu1 %v1789_v11  ;;  %1557 = vmatprep.subr.bf16.mxu0 %v1790_v14 }
  0x36   :  { %1591 = vmatprep.subr.bf16.mxu1 %v1791_v15  ;;  %773 = vmatprep.mubr.bf16.mxu0 %v91_v36 }
  0x37   :  { %829 = vmatprep.mubr.bf16.mxu1 %v93_v37 }
  0x38   :  { %1558 = vmatpush3.bf16.msra.mxu0 %v1792_v18 }
  0x39   :  { %1592 = vmatpush3.bf16.msra.mxu1 %v1793_v19  ;;  %1559 = vmatprep.subr.bf16.mxu0 %v1794_v24 }
  0x3a   :  { %1593 = vmatprep.subr.bf16.mxu1 %v1795_v25 }
  0x3c   :  { %1560 = vmatpush3.bf16.msra.mxu0 %v1796_v26 }
  0x3d   :  { %1594 = vmatpush3.bf16.msra.mxu1 %v1797_v27  ;;  %1561 = vmatprep.subr.bf16.mxu0 %v1798_v28 }
  0x3e   :  { %1595 = vmatprep.subr.bf16.mxu1 %v1799_v29 }
  0x40   :  { %1562 = vmatpush3.bf16.msra.mxu0 %v1800_v30 }
  0x41   :  { %1596 = vmatpush3.bf16.msra.mxu1 %v1801_v31 }
  0x43   :  { %774 = vmatmul.mubr.bf16.vlgmr.msra.gmra.mrb[12].mxu0 %v90_v41 }
  0x44   :  { %830 = vmatmul.mubr.bf16.vlgmr.msra.gmra.mrb[12].mxu1 %v92_v45  ;;  %781 = vmatprep.mubr.bf16.mxu0 %v99_v46 }
  0x45   :  { %837 = vmatprep.mubr.bf16.mxu1 %v101_v49 }
  0x4b   :  { %782 = vmatmul.mubr.bf16.gmra.mrb[16].mxu0 %v98_v56 }
  0x4c   :  { %838 = vmatmul.mubr.bf16.gmra.mrb[16].mxu1 %v100_v57  ;;  %789 = vmatprep.mubr.bf16.mxu0 %v107_v58 }
  0x4d   :  { %845 = vmatprep.mubr.bf16.mxu1 %v109_v59 }
  0x4e   :  { %18 = vsyncpa [#allocation3], 0  ;;  %v106_v62 = vpack.c.bf16 %v82_v60, %v82_v60  ;;  %v108_v63 = vpack.c.bf16 %v84_v61, %v84_v61  ;;  %v1839_v0 = vmov 0.0   ;;  %v1802_v1 = vld [vmem:[%s2358_s3] sm:$0xff]   ;;  %v1803_v2 = vld [vmem:[%s2358_s3 + $0x8] sm:$0xff]   ;;  %vm1840_vm0 = vmmov 0  }
  0x4f   :  { %1643 = vmatprep.subr.bf16.mxu0 %v1839_v0  ;;  %1729 = vmatprep.subr.bf16.mxu1 %v1839_v0  ;;  %v1381_v5 = vld [vmem:[%s2357_s2] ss:$0 sm:$0xff]  ;;  %vm884_vm1 = vcmask 261120   ;;  %vm997_vm2 = vcmask 523264   ;;  %vm1294_vm3 = vcmask 130048   ;;  %s1841_s15 = smov [#allocation2]  }
  0x50   :  { %1644 = vmatpush3.bf16.msra.mxu0 %v1802_v1  ;;  %1731 = vmatpush3.bf16.msra.mxu1 %v1802_v1  ;;  %s1370_s16 = sshll.u32 %s1841_s15, 4  ;;  %s1371_s16 = int_to_ptr.vmem [resolvable:$true] %s1370_s16 }
  0x51   :  { %1645 = vmatprep.subr.bf16.mxu0 %v1839_v0  ;;  %1730 = vmatprep.subr.bf16.mxu1 %v1839_v0  ;;  %p1820_p1 = scmp.lt.s32.totalorder %s1371_s16, %s1371_s16 }
  0x53   :  { %790 = vmatmul.mubr.bf16.gmra.mrb[20].mxu0 %v106_v62 }
  0x54   :  { %846 = vmatmul.mubr.bf16.gmra.mrb[20].mxu1 %v108_v63  ;;  %1646 = vmatpush3.bf16.msra.mxu0 %v1803_v2 }
  0x55   :  { %1732 = vmatpush3.bf16.msra.mxu1 %v1803_v2  ;;  %1679 = vmatprep.subr.bf16.mxu0 %v1839_v0 }
  0x56   :  { %1659 = vmatprep.subr.bf16.mxu1 %v1839_v0  ;;  %1647 = vmatprep.mubr.msk.bf16.mxu0 %vm1840_vm0, %v1839_v0 }
  0x57   :  { %1655 = vmatprep.mubr.msk.bf16.mxu1 %vm1840_vm0, %v1839_v0 }
  0xf6   :  { %v1495_v3 = vpop.f32.mrb[0].mxu0 }
  0xf7   :  { %v1529_v4 = vpop.f32.mrb[0].mxu1  ;;  %v1496_v6 = vpop.f32.mrb[1].mxu0 }
  0xf8   :  { %v1497_v7 = vadd.f32 %v1496_v6, %v1495_v3  ;;  %v1530_v8 = vpop.f32.mrb[1].mxu1  ;;  %v1498_v9 = vpop.f32.mrb[2].mxu0 }
  0xf9   :  { %v1531_v10 = vadd.f32 %v1530_v8, %v1529_v4  ;;  %v1532_v11 = vpop.f32.mrb[2].mxu1  ;;  %v1499_v12 = vpop.f32.mrb[3].mxu0 }
  0xfa   :  { %v664_v13 = vadd.f32 %v1497_v7, %v1381_v5  ;;  %v1500_v14 = vadd.f32 %v1499_v12, %v1498_v9  ;;  %v1533_v15 = vpop.f32.mrb[3].mxu1 }
  0xfb   :  { %v1534_v16 = vadd.f32 %v1533_v15, %v1532_v11 }
  0xfc   :  { %v720_v17 = vadd.f32 %v1531_v10, %v664_v13  ;;  %v667_v18 = vadd.f32 %v1500_v14, %v1381_v5 }
  0xfe   :  { %v723_v19 = vadd.f32 %v1534_v16, %v667_v18  ;;  %v1501_v20 = vpop.f32.mrb[4].mxu0 }
  0xff   :  { %v1502_v21 = vpop.f32.mrb[5].mxu0  ;;  %v1535_v26 = vpop.f32.mrb[4].mxu1 }
 0x100   :  { %v1503_v22 = vadd.f32 %v1502_v21, %v1501_v20  ;;  %v1504_v23 = vpop.f32.mrb[6].mxu0  ;;  %v1536_v28 = vpop.f32.mrb[5].mxu1 }
 0x101   :  { %v1505_v24 = vpop.f32.mrb[7].mxu0  ;;  %v1537_v30 = vadd.f32 %v1536_v28, %v1535_v26  ;;  %v1538_v31 = vpop.f32.mrb[6].mxu1 }
 0x102   :  { %v672_v25 = vadd.f32 %v1503_v22, %v1381_v5  ;;  %v1506_v27 = vadd.f32 %v1505_v24, %v1504_v23  ;;  %v1539_v32 = vpop.f32.mrb[7].mxu1 }
 0x103   :  { %v1540_v34 = vadd.f32 %v1539_v32, %v1538_v31 }
 0x104   :  { %v675_v29 = vadd.f32 %v1506_v27, %v1381_v5  ;;  %v728_v33 = vadd.f32 %v1537_v30, %v672_v25 }
 0x106   :  { %v731_v35 = vadd.f32 %v1540_v34, %v675_v29  ;;  %v1507_v36 = vpop.f32.mrb[8].mxu0 }
 0x107   :  { %v1508_v37 = vpop.f32.mrb[9].mxu0  ;;  %v1541_v42 = vpop.f32.mrb[8].mxu1 }
 0x108   :  { %v1509_v38 = vadd.f32 %v1508_v37, %v1507_v36  ;;  %v1510_v39 = vpop.f32.mrb[10].mxu0  ;;  %v1542_v43 = vpop.f32.mrb[9].mxu1  ;;  %v1804_v36 = vld [vmem:[%s2360_s5] sm:$0xff]  }
 0x109   :  { %v1511_v40 = vpop.f32.mrb[11].mxu0  ;;  %v1543_v44 = vadd.f32 %v1542_v43, %v1541_v42  ;;  %v1544_v45 = vpop.f32.mrb[10].mxu1  ;;  %v1806_v39 = vld [vmem:[%s2360_s5 + $0x10] sm:$0xff]   ;;  %v1809_v42 = vld [vmem:[%s2362_s7 + $0x8] sm:$0xff]   ;;  %v1446_v43 = vld [vmem:[%s2359_s4] ss:$0 sm:$0xff] }
 0x10a   :  { %v680_v41 = vadd.f32 %v1509_v38, %v1381_v5  ;;  %v1545_v46 = vpop.f32.mrb[11].mxu1  ;;  %v1805_v38 = vld [vmem:[%s2360_s5 + $0x8] sm:$0xff]   ;;  %v1807_v40 = vld [vmem:[%s2360_s5 + $0x18] sm:$0xff]  }
 0x10c   :  { %v736_v47 = vadd.f32 %v1543_v44, %v680_v41  ;;  %v1808_v41 = vld [vmem:[%s2362_s7] sm:$0xff]  }
 0x116   :  { %v1563_v48 = vpop.f32.mrb[12].mxu0 }
 0x117   :  { %v1597_v49 = vpop.f32.mrb[12].mxu1  ;;  %v1564_v50 = vpop.f32.mrb[13].mxu0 }
 0x118   :  { %v1565_v51 = vadd.f32 %v1564_v50, %v1563_v48  ;;  %v1598_v52 = vpop.f32.mrb[13].mxu1  ;;  %v1566_v53 = vpop.f32.mrb[14].mxu0 }
 0x119   :  { %v1599_v54 = vadd.f32 %v1598_v52, %v1597_v49  ;;  %v1600_v55 = vpop.f32.mrb[14].mxu1  ;;  %v1567_v56 = vpop.f32.mrb[15].mxu0 }
 0x11a   :  { %v776_v57 = vadd.f32 %v1565_v51, %v720_v17  ;;  %v1568_v58 = vadd.f32 %v1567_v56, %v1566_v53  ;;  %v1601_v59 = vpop.f32.mrb[15].mxu1 }
 0x11b   :  { %v1602_v60 = vadd.f32 %v1601_v59, %v1600_v55 }
 0x11c   :  { %v832_v61 = vadd.f32 %v1599_v54, %v776_v57  ;;  %v779_v62 = vadd.f32 %v1568_v58, %v723_v19 }
 0x11e   :  { %v835_v63 = vadd.f32 %v1602_v60, %v779_v62  ;;  %v1569_v1 = vpop.f32.mrb[16].mxu0  ;;  %v853_v4 = vmax.f32 %v832_v61, 0.0 }
 0x11f   :  { %v1603_v2 = vpop.f32.mrb[16].mxu1  ;;  %v1570_v3 = vpop.f32.mrb[17].mxu0 }
 0x120   :  { %v854_v5 = vmax.f32 %v835_v63, 0.0  ;;  %v1571_v6 = vadd.f32 %v1570_v3, %v1569_v1  ;;  %v1604_v7 = vpop.f32.mrb[17].mxu1  ;;  %v1572_v8 = vpop.f32.mrb[18].mxu0 }
 0x121   :  { %v1605_v9 = vadd.f32 %v1604_v7, %v1603_v2  ;;  %v1606_v10 = vpop.f32.mrb[18].mxu1  ;;  %v1573_v11 = vpop.f32.mrb[19].mxu0  ;;  %v1811_v7 = vld [vmem:[%s2362_s7 + $0x18] sm:$0xff]  }
 0x122   :  { %v858_v12 = vpack.c.bf16 %v854_v5, %v853_v4  ;;  %v784_v13 = vadd.f32 %v1571_v6, %v728_v33  ;;  %v1574_v14 = vadd.f32 %v1573_v11, %v1572_v8  ;;  %v1607_v15 = vpop.f32.mrb[19].mxu1  ;;  %v1810_v6 = vld [vmem:[%s2362_s7 + $0x10] sm:$0xff]   ;;  %v1812_v8 = vld [vmem:[%s2364_s9] sm:$0xff]  }
 0x123   :  { %v1608_v16 = vadd.f32 %v1607_v15, %v1606_v10  ;;  %v1452_v10 = vld [vmem:[%s2361_s6] ss:$0 sm:$0xff] }
 0x124   :  { %v840_v17 = vadd.f32 %v1605_v9, %v784_v13  ;;  %v787_v18 = vadd.f32 %v1574_v14, %v731_v35  ;;  %1648 = vmatmul.mubr.msk.bf16.vlgmr.msra.gmra.mrb[24].mxu0 %vm884_vm1, %v858_v12  ;;  %v1813_v9 = vld [vmem:[%s2364_s9 + $0x8] sm:$0xff]  }
 0x125   :  { %1651 = vmatprep.mubr.msk.bf16.mxu0 %vm1840_vm0, %v1839_v0  ;;  %1680 = vmatpush3.bf16.msra.mxu0 %v1808_v41 }
 0x126   :  { %v843_v19 = vadd.f32 %v1608_v16, %v787_v18  ;;  %v1575_v20 = vpop.f32.mrb[20].mxu0  ;;  %v855_v23 = vmax.f32 %v840_v17, 0.0  ;;  %1681 = vmatprep.subr.bf16.mxu0 %v1839_v0 }
 0x127   :  { %v1576_v21 = vpop.f32.mrb[21].mxu0  ;;  %v1609_v22 = vpop.f32.mrb[20].mxu1 }
 0x128   :  { %v856_v24 = vmax.f32 %v843_v19, 0.0  ;;  %v1577_v25 = vadd.f32 %v1576_v21, %v1575_v20  ;;  %v1610_v26 = vpop.f32.mrb[21].mxu1  ;;  %v1578_v27 = vpop.f32.mrb[22].mxu0 }
 0x129   :  { %v1611_v28 = vadd.f32 %v1610_v26, %v1609_v22  ;;  %v1579_v29 = vpop.f32.mrb[23].mxu0  ;;  %v1612_v30 = vpop.f32.mrb[22].mxu1  ;;  %1682 = vmatpush3.bf16.msra.mxu0 %v1809_v42 }
 0x12a   :  { %v859_v31 = vpack.c.bf16 %v856_v24, %v855_v23  ;;  %v792_v32 = vadd.f32 %v1577_v25, %v736_v47  ;;  %v1613_v33 = vpop.f32.mrb[23].mxu1  ;;  %1683 = vmatprep.subr.bf16.mxu0 %v1839_v0 }
 0x12c   :  { %v848_v34 = vadd.f32 %v1611_v28, %v792_v32  ;;  %1652 = vmatmul.mubr.msk.bf16.gmra.mrb[28].mxu0 %vm884_vm1, %v859_v31 }
 0x12d   :  { %1687 = vmatprep.mubr.msk.bf16.mxu0 %vm1840_vm0, %v1839_v0  ;;  %1684 = vmatpush3.bf16.msra.mxu0 %v1810_v6 }
 0x12e   :  { %v857_v35 = vmax.f32 %v848_v34, 0.0  ;;  %1685 = vmatprep.subr.bf16.mxu0 %v1839_v0 }
 0x130   :  { %v860_v37 = vpack.c.bf16 %v857_v35, %v857_v35 }
 0x131   :  { %1686 = vmatpush3.bf16.msra.mxu0 %v1811_v7 }
 0x132   :  { %1656 = vmatmul.mubr.msk.bf16.vlgmr.msra.gmra.mrb[24].mxu1 %vm884_vm1, %v860_v37  ;;  %1715 = vmatprep.subr.bf16.mxu0 %v1839_v0  ;;  %v1460_v37 = vld [vmem:[%s2363_s8] ss:$0 sm:$0xff] }
 0x133   :  { %1660 = vmatpush3.bf16.msra.mxu1 %v1804_v36  ;;  %1667 = vmatprep.mubr.msk.bf16.mxu1 %vm1840_vm0, %v1839_v0  ;;  %v1814_v36 = vld [vmem:[%s2366_s11] sm:$0xff]  }
 0x134   :  { %1661 = vmatprep.subr.bf16.mxu1 %v1839_v0 }
 0x137   :  { %1662 = vmatpush3.bf16.msra.mxu1 %v1805_v38 }
 0x138   :  { %1663 = vmatprep.subr.bf16.mxu1 %v1839_v0 }
 0x13b   :  { %1664 = vmatpush3.bf16.msra.mxu1 %v1806_v39 }
 0x13c   :  { %1665 = vmatprep.subr.bf16.mxu1 %v1839_v0 }
 0x13f   :  { %1666 = vmatpush3.bf16.msra.mxu1 %v1807_v40 }
 0x140   :  { %1699 = vmatprep.subr.bf16.mxu1 %v1839_v0 }
 0x1f7   :  { %v928_v44 = vpop.f32.mrb[24].mxu0 }
 0x1f8   :  { %v929_v45 = vadd.f32 %v1446_v43, %v928_v44  ;;  %v1649_v46 = vpop.f32.mrb[25].mxu0 }
 0x1f9   :  { %v931_v47 = vpop.f32.mrb[26].mxu0 }
 0x1fa   :  { %v932_v48 = vadd.f32 %v1446_v43, %v931_v47  ;;  %v1650_v49 = vpop.f32.mrb[27].mxu0  ;;  %v950_v50 = vmax.f32 %v929_v45, 0.0 }
 0x1fc   :  { %v951_v51 = vmax.f32 %v932_v48, 0.0 }
 0x1fe   :  { %v955_v52 = vpack.c.bf16 %v951_v51, %v950_v50 }
 0x1ff   :  { %v936_v53 = vpop.f32.mrb[28].mxu0 }
 0x200   :  { %v937_v54 = vadd.f32 %v1446_v43, %v936_v53  ;;  %v1653_v55 = vpop.f32.mrb[29].mxu0  ;;  %1668 = vmatmul.mubr.msk.bf16.vlgmr.msra.gmra.mrb[28].mxu1 %vm997_vm2, %v955_v52 }
 0x201   :  { %v939_v56 = vpop.f32.mrb[30].mxu0  ;;  %1671 = vmatprep.mubr.msk.bf16.mxu1 %vm1840_vm0, %v1839_v0  ;;  %1700 = vmatpush3.bf16.msra.mxu1 %v1812_v8 }
 0x202   :  { %v940_v57 = vadd.f32 %v1446_v43, %v939_v56  ;;  %v1654_v58 = vpop.f32.mrb[31].mxu0  ;;  %v952_v59 = vmax.f32 %v937_v54, 0.0  ;;  %1701 = vmatprep.subr.bf16.mxu1 %v1839_v0 }
 0x204   :  { %v953_v60 = vmax.f32 %v940_v57, 0.0 }
 0x205   :  { %v944_v61 = vpop.f32.mrb[24].mxu1  ;;  %1702 = vmatpush3.bf16.msra.mxu1 %v1813_v9 }
 0x206   :  { %v956_v62 = vpack.c.bf16 %v953_v60, %v952_v59  ;;  %v945_v63 = vadd.f32 %v1446_v43, %v944_v61  ;;  %v1657_v1 = vpop.f32.mrb[25].mxu1 }
 0x207   :  { %v947_v2 = vpop.f32.mrb[26].mxu1 }
 0x208   :  { %v1658_v3 = vpop.f32.mrb[27].mxu1  ;;  %1672 = vmatmul.mubr.msk.bf16.gmra.mrb[32].mxu1 %vm997_vm2, %v956_v62  ;;  %v954_v4 = vmax.f32 %v945_v63, 0.0  ;;  %v1468_v63 = vld [vmem:[%s2365_s10] ss:$0 sm:$0xff] }
 0x209   :  { %1675 = vmatprep.mubr.msk.bf16.mxu1 %vm1840_vm0, %v1839_v0 }
 0x20a   :  { %v957_v5 = vpack.c.bf16 %v954_v4, %v954_v4 }
 0x210   :  { %1676 = vmatmul.mubr.msk.bf16.gmra.mrb[36].mxu1 %vm997_vm2, %v957_v5 }
 0x211   :  { %1703 = vmatprep.mubr.msk.bf16.mxu1 %vm1840_vm0, %v1839_v0 }
 0x2d3   :  { %v1041_v11 = vpop.f32.mrb[28].mxu1 }
 0x2d4   :  { %v1042_v12 = vadd.f32 %v1452_v10, %v1041_v11  ;;  %v1669_v13 = vpop.f32.mrb[29].mxu1 }
 0x2d5   :  { %v1044_v14 = vpop.f32.mrb[30].mxu1 }
 0x2d6   :  { %v1045_v15 = vadd.f32 %v1452_v10, %v1044_v14  ;;  %v1670_v16 = vpop.f32.mrb[31].mxu1  ;;  %v1063_v17 = vmax.f32 %v1042_v12, 0.0 }
 0x2d8   :  { %v1064_v18 = vmax.f32 %v1045_v15, 0.0 }
 0x2da   :  { %v1068_v19 = vpack.c.bf16 %v1064_v18, %v1063_v17 }
 0x2db   :  { %v1049_v20 = vpop.f32.mrb[32].mxu1 }
 0x2dc   :  { %v1050_v21 = vadd.f32 %v1452_v10, %v1049_v20  ;;  %v1673_v22 = vpop.f32.mrb[33].mxu1  ;;  %1688 = vmatmul.mubr.msk.bf16.vlgmr.msra.gmra.mrb[32].mxu0 %vm997_vm2, %v1068_v19 }
 0x2dd   :  { %v1052_v23 = vpop.f32.mrb[34].mxu1  ;;  %1691 = vmatprep.mubr.msk.bf16.mxu0 %vm1840_vm0, %v1839_v0  ;;  %1716 = vmatpush3.bf16.msra.mxu0 %v1814_v36 }
 0x2de   :  { %v1053_v24 = vadd.f32 %v1452_v10, %v1052_v23  ;;  %v1674_v25 = vpop.f32.mrb[35].mxu1  ;;  %v1065_v26 = vmax.f32 %v1050_v21, 0.0 }
 0x2e0   :  { %v1066_v27 = vmax.f32 %v1053_v24, 0.0 }
 0x2e2   :  { %v1069_v28 = vpack.c.bf16 %v1066_v27, %v1065_v26  ;;  %v1474_v26 = vld [vmem:[%s2367_s12] ss:$0 sm:$0xff]  ;;  %s1815_s12 = scalar_lea.vmem %s1371_s16, 640 }
 0x2e3   :  { %v1057_v29 = vpop.f32.mrb[36].mxu1  ;;  %p1816_p0 = scmp.ne.s32.totalorder %s1371_s16, %s1815_s12  ;;  %p1821_p2 = scmp.lt.s32.totalorder %s1815_s12, %s1815_s12 }
 0x2e4   :  { %v1058_v30 = vadd.f32 %v1452_v10, %v1057_v29  ;;  %v1677_v31 = vpop.f32.mrb[37].mxu1  ;;  %1692 = vmatmul.mubr.msk.bf16.gmra.mrb[36].mxu0 %vm997_vm2, %v1069_v28 }
 0x2e5   :  { %v1060_v32 = vpop.f32.mrb[38].mxu1  ;;  %1695 = vmatprep.mubr.msk.bf16.mxu0 %vm1840_vm0, %v1839_v0  ;;  %p1822_p3 = por %p1821_p2, %p1820_p1 }
 0x2e6   :  { %v1067_v33 = vmax.f32 %v1058_v30, 0.0  ;;  %v1678_v34 = vpop.f32.mrb[39].mxu1 }
 0x2e7   :  { %p1823_p4 = pnand %p1822_p3, %p1816_p0 }
 0x2e8   :  { %v1070_v35 = vpack.c.bf16 %v1067_v33, %v1067_v33 }
 0x2ec   :  { %1696 = vmatmul.mubr.msk.bf16.gmra.mrb[40].mxu0 %vm997_vm2, %v1070_v35 }
 0x2ed   :  { %1717 = vmatprep.mubr.msk.bf16.mxu0 %vm1840_vm0, %v1839_v0 }
 0x3af   :  { %v1153_v38 = vpop.f32.mrb[32].mxu0 }
 0x3b0   :  { %v1154_v39 = vadd.f32 %v1460_v37, %v1153_v38  ;;  %v1689_v40 = vpop.f32.mrb[33].mxu0 }
 0x3b1   :  { %v1156_v41 = vpop.f32.mrb[34].mxu0 }
 0x3b2   :  { %v1157_v42 = vadd.f32 %v1460_v37, %v1156_v41  ;;  %v1690_v43 = vpop.f32.mrb[35].mxu0  ;;  %v1175_v44 = vmax.f32 %v1154_v39, 0.0 }
 0x3b4   :  { %v1176_v45 = vmax.f32 %v1157_v42, 0.0 }
 0x3b6   :  { %v1180_v46 = vpack.c.bf16 %v1176_v45, %v1175_v44 }
 0x3b7   :  { %v1161_v47 = vpop.f32.mrb[36].mxu0 }
 0x3b8   :  { %v1162_v48 = vadd.f32 %v1460_v37, %v1161_v47  ;;  %v1693_v49 = vpop.f32.mrb[37].mxu0  ;;  %1704 = vmatmul.mubr.msk.bf16.vlgmr.msra.gmra.mrb[40].mxu1 %vm884_vm1, %v1180_v46 }
 0x3b9   :  { %v1164_v50 = vpop.f32.mrb[38].mxu0  ;;  %1707 = vmatprep.mubr.msk.bf16.mxu1 %vm1840_vm0, %v1839_v0 }
 0x3ba   :  { %v1165_v51 = vadd.f32 %v1460_v37, %v1164_v50  ;;  %v1694_v52 = vpop.f32.mrb[39].mxu0  ;;  %v1177_v53 = vmax.f32 %v1162_v48, 0.0 }
 0x3bc   :  { %v1178_v54 = vmax.f32 %v1165_v51, 0.0 }
 0x3be   :  { %v1181_v55 = vpack.c.bf16 %v1178_v54, %v1177_v53 }
 0x3bf   :  { %v1169_v56 = vpop.f32.mrb[40].mxu0 }
 0x3c0   :  { %v1170_v57 = vadd.f32 %v1460_v37, %v1169_v56  ;;  %v1697_v58 = vpop.f32.mrb[41].mxu0  ;;  %1708 = vmatmul.mubr.msk.bf16.gmra.mrb[44].mxu1 %vm884_vm1, %v1181_v55 }
 0x3c1   :  { %v1172_v59 = vpop.f32.mrb[42].mxu0  ;;  %1711 = vmatprep.mubr.msk.bf16.mxu1 %vm1840_vm0, %v1839_v0 }
 0x3c2   :  { %v1179_v60 = vmax.f32 %v1170_v57, 0.0  ;;  %v1698_v61 = vpop.f32.mrb[43].mxu0 }
 0x3c4   :  { %v1182_v62 = vpack.c.bf16 %v1179_v60, %v1179_v60 }
 0x3c8   :  { %1712 = vmatmul.mubr.msk.bf16.gmra.mrb[48].mxu1 %vm884_vm1, %v1182_v62 }
 0x48b   :  { %v1249_v1 = vpop.f32.mrb[40].mxu1 }
 0x48c   :  { %v1250_v2 = vadd.f32 %v1468_v63, %v1249_v1  ;;  %v1705_v3 = vpop.f32.mrb[41].mxu1 }
 0x48d   :  { %v1252_v4 = vpop.f32.mrb[42].mxu1 }
 0x48e   :  { %v1253_v5 = vadd.f32 %v1468_v63, %v1252_v4  ;;  %v1706_v6 = vpop.f32.mrb[43].mxu1  ;;  %v1271_v7 = vmax.f32 %v1250_v2, 0.0 }
 0x490   :  { %v1272_v8 = vmax.f32 %v1253_v5, 0.0 }
 0x492   :  { %v1276_v9 = vpack.c.bf16 %v1272_v8, %v1271_v7 }
 0x493   :  { %v1257_v10 = vpop.f32.mrb[44].mxu1 }
 0x494   :  { %v1258_v11 = vadd.f32 %v1468_v63, %v1257_v10  ;;  %v1709_v12 = vpop.f32.mrb[45].mxu1  ;;  %1718 = vmatmul.mubr.msk.bf16.vlgmr.msra.gmra.mrb[44].mxu0 %vm1294_vm3, %v1276_v9 }
 0x495   :  { %v1260_v13 = vpop.f32.mrb[46].mxu1  ;;  %1721 = vmatprep.mubr.msk.bf16.mxu0 %vm1840_vm0, %v1839_v0 }
 0x496   :  { %v1261_v14 = vadd.f32 %v1468_v63, %v1260_v13  ;;  %v1710_v15 = vpop.f32.mrb[47].mxu1  ;;  %v1273_v16 = vmax.f32 %v1258_v11, 0.0 }
 0x498   :  { %v1274_v17 = vmax.f32 %v1261_v14, 0.0 }
 0x49a   :  { %v1277_v18 = vpack.c.bf16 %v1274_v17, %v1273_v16 }
 0x49b   :  { %v1265_v19 = vpop.f32.mrb[48].mxu1 }
 0x49c   :  { %v1266_v20 = vadd.f32 %v1468_v63, %v1265_v19  ;;  %v1713_v21 = vpop.f32.mrb[49].mxu1  ;;  %1722 = vmatmul.mubr.msk.bf16.gmra.mrb[48].mxu0 %vm1294_vm3, %v1277_v18 }
 0x49d   :  { %v1268_v22 = vpop.f32.mrb[50].mxu1  ;;  %1725 = vmatprep.mubr.msk.bf16.mxu0 %vm1840_vm0, %v1839_v0 }
 0x49e   :  { %v1275_v23 = vmax.f32 %v1266_v20, 0.0  ;;  %v1714_v24 = vpop.f32.mrb[51].mxu1 }
 0x4a0   :  { %v1278_v25 = vpack.c.bf16 %v1275_v23, %v1275_v23 }
 0x4a4   :  { %1726 = vmatmul.mubr.msk.bf16.gmra.mrb[52].mxu0 %vm1294_vm3, %v1278_v25 }
 0x567   :  { %v1338_v27 = vpop.f32.mrb[44].mxu0 }
 0x568   :  { %v1339_v28 = vadd.f32 %v1474_v26, %v1338_v27  ;;  %v1719_v29 = vpop.f32.mrb[45].mxu0 }
 0x569   :  { %v1341_v30 = vpop.f32.mrb[46].mxu0 }
 0x56a   :  { %1360 = vst [vmem:[#allocation2] sm:$0xff] %v1339_v28  ;;  %v1342_v31 = vadd.f32 %v1474_v26, %v1341_v30  ;;  %v1720_v32 = vpop.f32.mrb[47].mxu0 }
 0x56c   :  { %1361 = vst [vmem:[#allocation2 + $0x8] sm:$0xff] %v1342_v31 }
 0x56f   :  { %v1346_v33 = vpop.f32.mrb[48].mxu0 }
 0x570   :  { %v1347_v34 = vadd.f32 %v1474_v26, %v1346_v33  ;;  %v1723_v0 = vpop.f32.mrb[49].mxu0 }
 0x571   :  { %v1349_v35 = vpop.f32.mrb[50].mxu0 }
 0x572   :  { %1362 = vst [vmem:[#allocation2 + $0x10] sm:$0xff] %v1347_v34  ;;  %v1350_v36 = vadd.f32 %v1474_v26, %v1349_v35  ;;  %v1724_v37 = vpop.f32.mrb[51].mxu0 }
 0x574   :  { %1363 = vst [vmem:[#allocation2 + $0x18] sm:$0xff] %v1350_v36 }
 0x577   :  { %v1354_v38 = vpop.f32.mrb[52].mxu0 }
 0x578   :  { %v1355_v39 = vadd.f32 %v1474_v26, %v1354_v38  ;;  %v1727_v40 = vpop.f32.mrb[53].mxu0 }
 0x579   :  { %v1357_v41 = vpop.f32.mrb[54].mxu0 }
 0x57a   :  { %1364 = vst [vmem:[#allocation2 + $0x20] sm:$0xff] %v1355_v39  ;;  %v1728_v42 = vpop.f32.mrb[55].mxu0 }
 0x57b   :  { %1826 = shalt.err (!%p1823_p4)
}
 0x57c   :  { %s1827_s19 = scalar_lea.hbm %s2368_s13, 640 }
 0x57d   :  { %p1828_p5 = scmp.ne.s32.totalorder %s2368_s13, %s1827_s19  ;;  %p1831_p6 = scmp.lt.u32.totalorder %s1827_s19, %s2368_s13 }
 0x57f   :  { %p1833_p7 = pnand %p1831_p6, %p1828_p5 }
 0x581   :  { %1836 = shalt.err (!%p1833_p7)
}
 0x582   :  { %s1842_s24 = smov 128   ;;  %s1843_s25 = smov 8  }
 0x583   :  { %1376 = dma.vmem_to_hbm [thread:$0]  %s1371_s16, 640, %s2368_s13, [#allocation3], %s1842_s24, %s1842_s24, %s1843_s25  }
 0x584   :  { %1837 = dma.done.wait [#allocation3], 640  }
 0x585   :  { %1838 = vsyncadd [#allocation3], 4294966656 }
 0x586   :  { %1380 = vsyncpa [#allocation3], 1 }

</bundles_post_ra>
